<compile_context>
chip_gen: v5e
topology: v5e:2x2
jax: 0.10.0
libtpu: 0.0.40
codegen_flags: <defaults>
</compile_context>

<pallas_src>
import math

import jax
import jax.numpy as jnp
from jax.experimental import pallas as pl
from jax.experimental.pallas import tpu as pltpu

# ----------------------------- model config ---------------------------------
VOCAB = 100
HIDDEN = 32
NUM_HEADS = 4
HEAD_DIM = HIDDEN // NUM_HEADS
INTERMEDIATE = 64
NUM_LAYERS = 2
MAX_POS = 32
TYPE_VOCAB = 2
CLASS_NUM = 5
LN_EPS = 1e-12
CLS_PAD = 128  # lane-dense padded width for the fused start/end classifier
ATTN_SCALE = 1.0 / math.sqrt(HEAD_DIM)


# ----------------------------- kernel helpers --------------------------------
def _ln(x, g, b, eps=LN_EPS):
    mean = jnp.mean(x, axis=-1, keepdims=True)
    var = jnp.mean((x - mean) ** 2, axis=-1, keepdims=True)
    return (x - mean) * jax.lax.rsqrt(var + eps) * g + b


def _mm(a_f32, w_bf16):
    # bf16 MXU operands, f32 accumulation.
    return jnp.dot(a_f32.astype(jnp.bfloat16), w_bf16,
                   preferred_element_type=jnp.float32)


# ----------------------------- fused forward kernel --------------------------
def _make_span_kernel(nb):
    """Build the fused kernel body handling `nb` batch elements per grid step."""

    def kernel(
        x_ref, bias_ref, embg_ref, embb_ref,
        wqkv_ref, bqkv_ref, wo_ref, bo_ref, ln1g_ref, ln1b_ref,
        wi_ref, bi_ref, wo2_ref, bo2_ref, ln2g_ref, ln2b_ref,
        wcls_ref, bcls_ref,
        o_ref,
    ):
        bf16 = jnp.bfloat16
        x = _ln(x_ref[...], embg_ref[...], embb_ref[...])      # [nb*S, H] f32
        seq = x.shape[0] // nb                                   # static S

        # Stacked (batch, head) additive key-mask bias for the fused softmax.
        # Layer-invariant -> built once, outside the layer loop.
        bias_all = bias_ref[...]                                 # [nb, 1, S]
        bias_stack = jnp.concatenate(
            [jnp.broadcast_to(bias_all[b], (NUM_HEADS * seq, seq))
             for b in range(nb)],
            axis=0)                                              # [nb*NH*S, S]

        for l in range(NUM_LAYERS):                              # static unroll
            # --- fused QKV projection: one lane-dense [H, 3H] matmul ---------
            # (ATTN_SCALE already folded into the Q columns on the host.)
            qkv = _mm(x, wqkv_ref[l]) + bqkv_ref[l]              # [nb*S, 3H]

            # --- scores for every (batch, head), stacked along sublanes ------
            # No k.T: contraction on the last dim of both operands.
            s_blocks = []
            for b in range(nb):
                r0 = b * seq
                for h in range(NUM_HEADS):
                    c0 = h * HEAD_DIM
                    q = qkv[r0:r0 + seq, c0:c0 + HEAD_DIM].astype(bf16)
                    k = qkv[r0:r0 + seq,
                            HIDDEN + c0:HIDDEN + c0 + HEAD_DIM].astype(bf16)
                    s_blocks.append(jax.lax.dot_general(
                        q, k, (((1,), (1,)), ((), ())),
                        preferred_element_type=jnp.float32))
            s = jnp.concatenate(s_blocks, axis=0) + bias_stack   # [nb*NH*S, S]

            # --- one softmax for all (batch, head) tiles ----------------------
            s = s - jnp.max(s, axis=-1, keepdims=True)
            p = jnp.exp(s)
            p = p * pl.reciprocal(jnp.sum(p, axis=-1, keepdims=True),
                                  approx=True)
            p_bf = p.astype(bf16)

            # --- per-(batch, head) context; concatenated in vregs ------------
            ctx_rows = []
            for b in range(nb):
                r0 = b * seq
                heads = []
                for h in range(NUM_HEADS):
                    c0 = 2 * HIDDEN + h * HEAD_DIM
                    v = qkv[r0:r0 + seq, c0:c0 + HEAD_DIM].astype(bf16)
                    blk = (b * NUM_HEADS + h) * seq
                    ph = p_bf[blk:blk + seq, :]
                    heads.append(jnp.dot(ph, v,
                                         preferred_element_type=jnp.float32))
                ctx_rows.append(jnp.concatenate(heads, axis=-1))  # [S, H]
            ctx = jnp.concatenate(ctx_rows, axis=0)               # [nb*S, H]

            # --- output projection + residual + LN ----------------------------
            attn_out = _mm(ctx, wo_ref[l]) + bo_ref[l]
            x = _ln(x + attn_out, ln1g_ref[l], ln1b_ref[l])

            # --- FFN (GELU) + residual + LN ------------------------------------
            inter = jax.nn.gelu(_mm(x, wi_ref[l]) + bi_ref[l], approximate=True)
            ffn = _mm(inter, wo2_ref[l]) + bo2_ref[l]
            x = _ln(x + ffn, ln2g_ref[l], ln2b_ref[l])

        # --- fused start/end classifiers (+ ReLU), lane-dense bf16 writeback ---
        logits = _mm(x, wcls_ref[...]) + bcls_ref[...]           # [nb*S, 128]
        o_ref[...] = jnp.maximum(logits, 0.0).astype(o_ref.dtype)

    return kernel


# ----------------------------- pallas_call wrapper ----------------------------
def _chip_has_multiple_tensorcores():
    # v7x has 2 TensorCores per chip (one jax device); v5e/v6e have 1.
    try:
        kind = jax.devices()[0].device_kind.lower()
    except Exception:
        return False
    return "v7" in kind


def span_model_forward(params, ids, mask, token_type_ids):
    B, S = ids.shape
    M = B * S
    bf16 = jnp.bfloat16
    L = NUM_LAYERS

    # Grid layout: per-batch grid on multi-TC chips (v7x), collapsed single
    # step on single-TC chips (v5e/v6e) to avoid per-step pipeline overhead.
    nb = 1 if (_chip_has_multiple_tensorcores() and B > 1) else B
    grid = (B // nb,)

    # Embedding gathers are XLA glue; everything else runs inside the kernel.
    h = (
        params["word_emb"][ids]
        + params["pos_emb"][jnp.arange(S)][None, :, :]
        + params["type_emb"][token_type_ids]
    ).reshape(M, HIDDEN)
    attn_bias = ((1.0 - mask.astype(jnp.float32)) * -1e9).reshape(B, 1, S)

    # Fold the 1/sqrt(head_dim) attention scale into the Q columns of the
    # fused QKV projection (outside the kernel).
    wqkv = params["wqkv"].at[:, :, :HIDDEN].multiply(ATTN_SCALE)
    bqkv = params["bqkv"].at[:, :, :HIDDEN].multiply(ATTN_SCALE)

    def full_spec(shape):
        zeros = (0,) * len(shape)
        return pl.BlockSpec(shape, lambda g, _z=zeros: _z)

    in_specs = [
        pl.BlockSpec((nb * S, HIDDEN), lambda g: (g, 0)),      # x (token rows)
        pl.BlockSpec((nb, 1, S), lambda g: (g, 0, 0)),          # mask bias
        full_spec((1, HIDDEN)), full_spec((1, HIDDEN)),         # emb LN
        full_spec((L, HIDDEN, 3 * HIDDEN)), full_spec((L, 1, 3 * HIDDEN)),
        full_spec((L, HIDDEN, HIDDEN)), full_spec((L, 1, HIDDEN)),
        full_spec((L, 1, HIDDEN)), full_spec((L, 1, HIDDEN)),
        full_spec((L, HIDDEN, INTERMEDIATE)), full_spec((L, 1, INTERMEDIATE)),
        full_spec((L, INTERMEDIATE, HIDDEN)), full_spec((L, 1, HIDDEN)),
        full_spec((L, 1, HIDDEN)), full_spec((L, 1, HIDDEN)),
        full_spec((HIDDEN, CLS_PAD)), full_spec((1, CLS_PAD)),
    ]

    out = pl.pallas_call(
        _make_span_kernel(nb),
        grid=grid,
        in_specs=in_specs,
        out_specs=pl.BlockSpec((nb * S, CLS_PAD), lambda g: (g, 0)),
        out_shape=jax.ShapeDtypeStruct((M, CLS_PAD), jnp.bfloat16),
        compiler_params=pltpu.CompilerParams(
            dimension_semantics=("parallel",)),
    )(
        h, attn_bias,
        params["emb_ln_g"].reshape(1, HIDDEN),
        params["emb_ln_b"].reshape(1, HIDDEN),
        wqkv.astype(bf16), bqkv,
        params["wo"].astype(bf16), params["bo"],
        params["ln1_g"], params["ln1_b"],
        params["wi"].astype(bf16), params["bi"],
        params["wo2"].astype(bf16), params["bo2"],
        params["ln2_g"], params["ln2_b"],
        params["wcls"].astype(bf16), params["bcls"],
    )

    out = out.astype(jnp.float32)
    start = out[:, :CLASS_NUM].reshape(B, S, CLASS_NUM)
    end = out[:, CLASS_NUM:2 * CLASS_NUM].reshape(B, S, CLASS_NUM)
    return start, end


# ----------------------------- parameters ------------------------------------
def init_params(key):
    def nrm(k, shape, scale=0.02):
        return scale * jax.random.normal(k, shape, dtype=jnp.float32)

    keys = jax.random.split(key, 10)
    L = NUM_LAYERS
    p = {
        "word_emb": nrm(keys[0], (VOCAB, HIDDEN)),
        "pos_emb": nrm(keys[1], (MAX_POS, HIDDEN)),
        "type_emb": nrm(keys[2], (TYPE_VOCAB, HIDDEN)),
        "emb_ln_g": jnp.ones((HIDDEN,), jnp.float32),
        "emb_ln_b": jnp.zeros((HIDDEN,), jnp.float32),
        # stacked per-layer encoder weights, leading dim = layer
        "wqkv": nrm(keys[3], (L, HIDDEN, 3 * HIDDEN)),
        "bqkv": jnp.zeros((L, 1, 3 * HIDDEN), jnp.float32),
        "wo": nrm(keys[4], (L, HIDDEN, HIDDEN)),
        "bo": jnp.zeros((L, 1, HIDDEN), jnp.float32),
        "ln1_g": jnp.ones((L, 1, HIDDEN), jnp.float32),
        "ln1_b": jnp.zeros((L, 1, HIDDEN), jnp.float32),
        "wi": nrm(keys[5], (L, HIDDEN, INTERMEDIATE)),
        "bi": jnp.zeros((L, 1, INTERMEDIATE), jnp.float32),
        "wo2": nrm(keys[6], (L, INTERMEDIATE, HIDDEN)),
        "bo2": jnp.zeros((L, 1, HIDDEN), jnp.float32),
        "ln2_g": jnp.ones((L, 1, HIDDEN), jnp.float32),
        "ln2_b": jnp.zeros((L, 1, HIDDEN), jnp.float32),
    }
    # start/end classifier heads fused along output lanes, zero-padded to 128
    start_w = nrm(keys[7], (HIDDEN, CLASS_NUM))
    end_w = nrm(keys[8], (HIDDEN, CLASS_NUM))
    wcls = jnp.zeros((HIDDEN, CLS_PAD), jnp.float32)
    wcls = wcls.at[:, :CLASS_NUM].set(start_w)
    wcls = wcls.at[:, CLASS_NUM:2 * CLASS_NUM].set(end_w)
    p["wcls"] = wcls
    p["bcls"] = jnp.zeros((1, CLS_PAD), jnp.float32)
    return p


# ----------------------------- pure-JAX reference -----------------------------
def span_model_reference(params, ids, mask, token_type_ids):
    B, S = ids.shape
    bf16 = jnp.bfloat16

    def ln(x, g, b):
        mean = jnp.mean(x, -1, keepdims=True)
        var = jnp.mean((x - mean) ** 2, -1, keepdims=True)
        return (x - mean) * jax.lax.rsqrt(var + LN_EPS) * g + b

    def mm(a, w):
        return jnp.dot(a.astype(bf16), w.astype(bf16),
                       preferred_element_type=jnp.float32)

    h = (
        params["word_emb"][ids]
        + params["pos_emb"][jnp.arange(S)][None, :, :]
        + params["type_emb"][token_type_ids]
    )
    x = ln(h, params["emb_ln_g"], params["emb_ln_b"])
    bias = ((1.0 - mask.astype(jnp.float32)) * -1e9)[:, None, None, :]
    for l in range(NUM_LAYERS):
        qkv = mm(x, params["wqkv"][l]) + params["bqkv"][l]
        q, k, v = jnp.split(qkv, 3, axis=-1)

        def heads(t):
            return t.reshape(B, S, NUM_HEADS, HEAD_DIM).transpose(0, 2, 1, 3)

        qh, kh, vh = heads(q), heads(k), heads(v)
        s = jnp.einsum("bhqd,bhkd->bhqk", qh, kh) * ATTN_SCALE + bias
        p = jax.nn.softmax(s, axis=-1)
        ctx = jnp.einsum("bhqk,bhkd->bhqd", p, vh)
        ctx = ctx.transpose(0, 2, 1, 3).reshape(B, S, HIDDEN)
        attn_out = mm(ctx, params["wo"][l]) + params["bo"][l]
        x = ln(x + attn_out, params["ln1_g"][l], params["ln1_b"][l])
        inter = jax.nn.gelu(mm(x, params["wi"][l]) + params["bi"][l],
                            approximate=True)
        ffn = mm(inter, params["wo2"][l]) + params["bo2"][l]
        x = ln(x + ffn, params["ln2_g"][l], params["ln2_b"][l])
    logits = jnp.maximum(mm(x, params["wcls"]) + params["bcls"], 0.0)
    return logits[:, :, :CLASS_NUM], logits[:, :, CLASS_NUM:2 * CLASS_NUM]


# ----------------------------- demo / main ------------------------------------
if __name__ == "__main__":
    key = jax.random.PRNGKey(0)
    pkey, ikey, tkey = jax.random.split(key, 3)

    params = init_params(pkey)

    B, S = 2, 8
    ids = jax.random.randint(ikey, (B, S), 0, VOCAB, dtype=jnp.int32)
    token_type_ids = jax.random.randint(tkey, (B, S), 0, TYPE_VOCAB, dtype=jnp.int32)
    mask = jnp.ones((B, S), dtype=jnp.int32).at[1, 6:].set(0)  # pad tail of seq 1

    fwd = jax.jit(span_model_forward)
    start_out, end_out = fwd(params, ids, mask, token_type_ids)
    jax.block_until_ready((start_out, end_out))

    ref_start, ref_end = jax.jit(span_model_reference)(
        params, ids, mask, token_type_ids)
    jax.block_until_ready((ref_start, ref_end))

    assert start_out.shape == (B, S, CLASS_NUM)
    assert end_out.shape == (B, S, CLASS_NUM)
    assert bool(jnp.all(start_out >= 0.0)) and bool(jnp.all(end_out >= 0.0))
    assert bool(jnp.all(jnp.isfinite(start_out))) and bool(jnp.all(jnp.isfinite(end_out)))
    assert bool(jnp.allclose(start_out, ref_start, atol=3e-2, rtol=3e-2))
    assert bool(jnp.allclose(end_out, ref_end, atol=3e-2, rtol=3e-2))
    print("KERNEL_OK")
</pallas_src>

<mosaic_0001>
module attributes {stable_mosaic.version = 11 : i64} {
  func.func @kernel(%arg0: i32, %arg1: memref<16x32xf32, #tpu.memory_space<vmem>>, %arg2: memref<2x1x8xf32, #tpu.memory_space<vmem>>, %arg3: memref<1x32xf32, #tpu.memory_space<vmem>>, %arg4: memref<1x32xf32, #tpu.memory_space<vmem>>, %arg5: memref<2x32x96xbf16, #tpu.memory_space<vmem>>, %arg6: memref<2x1x96xf32, #tpu.memory_space<vmem>>, %arg7: memref<2x32x32xbf16, #tpu.memory_space<vmem>>, %arg8: memref<2x1x32xf32, #tpu.memory_space<vmem>>, %arg9: memref<2x1x32xf32, #tpu.memory_space<vmem>>, %arg10: memref<2x1x32xf32, #tpu.memory_space<vmem>>, %arg11: memref<2x32x64xbf16, #tpu.memory_space<vmem>>, %arg12: memref<2x1x64xf32, #tpu.memory_space<vmem>>, %arg13: memref<2x64x32xbf16, #tpu.memory_space<vmem>>, %arg14: memref<2x1x32xf32, #tpu.memory_space<vmem>>, %arg15: memref<2x1x32xf32, #tpu.memory_space<vmem>>, %arg16: memref<2x1x32xf32, #tpu.memory_space<vmem>>, %arg17: memref<32x128xbf16, #tpu.memory_space<vmem>>, %arg18: memref<1x128xf32, #tpu.memory_space<vmem>>, %arg19: memref<16x128xbf16, #tpu.memory_space<vmem>>) attributes {dimension_semantics = [#tpu.dimension_semantics<parallel>], iteration_bounds = array<i64: 1>, scalar_prefetch = 0 : i64, scratch_operands = 0 : i64, tpu.core_type = #tpu.core_type<tc>, window_params = [{transform_indices = @transform_0, window_bounds = array<i64: 16, 32>}, {transform_indices = @transform_1, window_bounds = array<i64: 2, 1, 8>}, {pipeline_mode = #tpu.pipeline_mode<synchronous>, transform_indices = @transform_2, window_bounds = array<i64: 1, 32>}, {pipeline_mode = #tpu.pipeline_mode<synchronous>, transform_indices = @transform_3, window_bounds = array<i64: 1, 32>}, {pipeline_mode = #tpu.pipeline_mode<synchronous>, transform_indices = @transform_4, window_bounds = array<i64: 2, 32, 96>}, {pipeline_mode = #tpu.pipeline_mode<synchronous>, transform_indices = @transform_5, window_bounds = array<i64: 2, 1, 96>}, {pipeline_mode = #tpu.pipeline_mode<synchronous>, transform_indices = @transform_6, window_bounds = array<i64: 2, 32, 32>}, {pipeline_mode = #tpu.pipeline_mode<synchronous>, transform_indices = @transform_7, window_bounds = array<i64: 2, 1, 32>}, {pipeline_mode = #tpu.pipeline_mode<synchronous>, transform_indices = @transform_8, window_bounds = array<i64: 2, 1, 32>}, {pipeline_mode = #tpu.pipeline_mode<synchronous>, transform_indices = @transform_9, window_bounds = array<i64: 2, 1, 32>}, {pipeline_mode = #tpu.pipeline_mode<synchronous>, transform_indices = @transform_10, window_bounds = array<i64: 2, 32, 64>}, {pipeline_mode = #tpu.pipeline_mode<synchronous>, transform_indices = @transform_11, window_bounds = array<i64: 2, 1, 64>}, {pipeline_mode = #tpu.pipeline_mode<synchronous>, transform_indices = @transform_12, window_bounds = array<i64: 2, 64, 32>}, {pipeline_mode = #tpu.pipeline_mode<synchronous>, transform_indices = @transform_13, window_bounds = array<i64: 2, 1, 32>}, {pipeline_mode = #tpu.pipeline_mode<synchronous>, transform_indices = @transform_14, window_bounds = array<i64: 2, 1, 32>}, {pipeline_mode = #tpu.pipeline_mode<synchronous>, transform_indices = @transform_15, window_bounds = array<i64: 2, 1, 32>}, {pipeline_mode = #tpu.pipeline_mode<synchronous>, transform_indices = @transform_16, window_bounds = array<i64: 32, 128>}, {pipeline_mode = #tpu.pipeline_mode<synchronous>, transform_indices = @transform_17, window_bounds = array<i64: 1, 128>}, {transform_indices = @transform_18, window_bounds = array<i64: 16, 128>}]} {
    %c0 = arith.constant 0 : index
    %c0_0 = arith.constant 0 : index
    %0 = vector.load %arg1[%c0, %c0_0] : memref<16x32xf32, #tpu.memory_space<vmem>>, vector<16x32xf32>
    %c0_1 = arith.constant 0 : index
    %c0_2 = arith.constant 0 : index
    %1 = vector.load %arg3[%c0_1, %c0_2] : memref<1x32xf32, #tpu.memory_space<vmem>>, vector<1x32xf32>
    %c0_3 = arith.constant 0 : index
    %c0_4 = arith.constant 0 : index
    %2 = vector.load %arg4[%c0_3, %c0_4] : memref<1x32xf32, #tpu.memory_space<vmem>>, vector<1x32xf32>
    %cst = arith.constant dense<0.000000e+00> : vector<16xf32>
    %3 = vector.multi_reduction <add>, %0, %cst [1] : vector<16x32xf32> to vector<16xf32>
    %4 = vector.shape_cast %3 : vector<16xf32> to vector<16x1xf32>
    %cst_5 = arith.constant 3.200000e+01 : f32
    %5 = vector.broadcast %cst_5 : f32 to vector<16x1xf32>
    %6 = arith.divf %4, %5 : vector<16x1xf32>
    %7 = vector.broadcast %6 : vector<16x1xf32> to vector<16x32xf32>
    %8 = arith.subf %0, %7 : vector<16x32xf32>
    %9 = arith.mulf %8, %8 : vector<16x32xf32>
    %cst_6 = arith.constant dense<0.000000e+00> : vector<16xf32>
    %10 = vector.multi_reduction <add>, %9, %cst_6 [1] : vector<16x32xf32> to vector<16xf32>
    %11 = vector.shape_cast %10 : vector<16xf32> to vector<16x1xf32>
    %cst_7 = arith.constant 3.200000e+01 : f32
    %12 = vector.broadcast %cst_7 : f32 to vector<16x1xf32>
    %13 = arith.divf %11, %12 : vector<16x1xf32>
    %14 = vector.broadcast %6 : vector<16x1xf32> to vector<16x32xf32>
    %15 = arith.subf %0, %14 : vector<16x32xf32>
    %cst_8 = arith.constant 9.99999996E-13 : f32
    %16 = vector.broadcast %cst_8 : f32 to vector<16x1xf32>
    %17 = arith.addf %13, %16 : vector<16x1xf32>
    %18 = math.rsqrt %17 : vector<16x1xf32>
    %19 = vector.broadcast %18 : vector<16x1xf32> to vector<16x32xf32>
    %20 = arith.mulf %15, %19 : vector<16x32xf32>
    %21 = vector.broadcast %1 : vector<1x32xf32> to vector<16x32xf32>
    %22 = arith.mulf %20, %21 : vector<16x32xf32>
    %23 = vector.broadcast %2 : vector<1x32xf32> to vector<16x32xf32>
    %24 = arith.addf %22, %23 : vector<16x32xf32>
    %c0_9 = arith.constant 0 : index
    %c0_10 = arith.constant 0 : index
    %c0_11 = arith.constant 0 : index
    %25 = vector.load %arg2[%c0_9, %c0_10, %c0_11] : memref<2x1x8xf32, #tpu.memory_space<vmem>>, vector<2x1x8xf32>
    %26 = vector.extract_strided_slice %25 {offsets = [0, 0, 0], sizes = [1, 1, 8], strides = [1, 1, 1]} : vector<2x1x8xf32> to vector<1x1x8xf32>
    %27 = vector.shape_cast %26 : vector<1x1x8xf32> to vector<1x8xf32>
    %28 = vector.shape_cast %27 : vector<1x8xf32> to vector<1x8xf32>
    %29 = vector.broadcast %28 : vector<1x8xf32> to vector<32x8xf32>
    %30 = vector.extract_strided_slice %25 {offsets = [1, 0, 0], sizes = [1, 1, 8], strides = [1, 1, 1]} : vector<2x1x8xf32> to vector<1x1x8xf32>
    %31 = vector.shape_cast %30 : vector<1x1x8xf32> to vector<1x8xf32>
    %32 = vector.shape_cast %31 : vector<1x8xf32> to vector<1x8xf32>
    %33 = vector.broadcast %32 : vector<1x8xf32> to vector<32x8xf32>
    %34 = tpu.concatenate %29, %33 in 0 : vector<32x8xf32>, vector<32x8xf32> -> vector<64x8xf32>
    %c0_12 = arith.constant 0 : index
    %c0_13 = arith.constant 0 : index
    %c0_14 = arith.constant 0 : index
    %35 = vector.load %arg5[%c0_12, %c0_13, %c0_14] : memref<2x32x96xbf16, #tpu.memory_space<vmem>>, vector<1x32x96xbf16>
    %36 = vector.shape_cast %35 : vector<1x32x96xbf16> to vector<32x96xbf16>
    %37 = arith.truncf %24 : vector<16x32xf32> to vector<16x32xbf16>
    %cst_15 = arith.constant dense<0.000000e+00> : vector<16x96xf32>
    %38 = tpu.matmul %37, %36, %cst_15 {dimension_numbers = #tpu.dot_dimension_numbers<[1], [0], [0], [1], [0, 0, 1, 1], [], []>} : vector<16x32xbf16>, vector<32x96xbf16>, vector<16x96xf32> -> vector<16x96xf32>
    %c0_16 = arith.constant 0 : index
    %c0_17 = arith.constant 0 : index
    %c0_18 = arith.constant 0 : index
    %39 = vector.load %arg6[%c0_16, %c0_17, %c0_18] : memref<2x1x96xf32, #tpu.memory_space<vmem>>, vector<1x1x96xf32>
    %40 = vector.shape_cast %39 : vector<1x1x96xf32> to vector<1x96xf32>
    %41 = vector.broadcast %40 : vector<1x96xf32> to vector<16x96xf32>
    %42 = arith.addf %38, %41 : vector<16x96xf32>
    %43 = vector.extract_strided_slice %42 {offsets = [0, 0], sizes = [8, 8], strides = [1, 1]} : vector<16x96xf32> to vector<8x8xf32>
    %44 = arith.truncf %43 : vector<8x8xf32> to vector<8x8xbf16>
    %45 = vector.extract_strided_slice %42 {offsets = [0, 32], sizes = [8, 8], strides = [1, 1]} : vector<16x96xf32> to vector<8x8xf32>
    %46 = arith.truncf %45 : vector<8x8xf32> to vector<8x8xbf16>
    %cst_19 = arith.constant dense<0.000000e+00> : vector<8x8xf32>
    %47 = tpu.matmul %44, %46, %cst_19 {dimension_numbers = #tpu.dot_dimension_numbers<[1], [1], [0], [0], [0, 0, 1, 0], [], []>} : vector<8x8xbf16>, vector<8x8xbf16>, vector<8x8xf32> -> vector<8x8xf32>
    %48 = vector.extract_strided_slice %42 {offsets = [0, 8], sizes = [8, 8], strides = [1, 1]} : vector<16x96xf32> to vector<8x8xf32>
    %49 = arith.truncf %48 : vector<8x8xf32> to vector<8x8xbf16>
    %50 = vector.extract_strided_slice %42 {offsets = [0, 40], sizes = [8, 8], strides = [1, 1]} : vector<16x96xf32> to vector<8x8xf32>
    %51 = arith.truncf %50 : vector<8x8xf32> to vector<8x8xbf16>
    %cst_20 = arith.constant dense<0.000000e+00> : vector<8x8xf32>
    %52 = tpu.matmul %49, %51, %cst_20 {dimension_numbers = #tpu.dot_dimension_numbers<[1], [1], [0], [0], [0, 0, 1, 0], [], []>} : vector<8x8xbf16>, vector<8x8xbf16>, vector<8x8xf32> -> vector<8x8xf32>
    %53 = vector.extract_strided_slice %42 {offsets = [0, 16], sizes = [8, 8], strides = [1, 1]} : vector<16x96xf32> to vector<8x8xf32>
    %54 = arith.truncf %53 : vector<8x8xf32> to vector<8x8xbf16>
    %55 = vector.extract_strided_slice %42 {offsets = [0, 48], sizes = [8, 8], strides = [1, 1]} : vector<16x96xf32> to vector<8x8xf32>
    %56 = arith.truncf %55 : vector<8x8xf32> to vector<8x8xbf16>
    %cst_21 = arith.constant dense<0.000000e+00> : vector<8x8xf32>
    %57 = tpu.matmul %54, %56, %cst_21 {dimension_numbers = #tpu.dot_dimension_numbers<[1], [1], [0], [0], [0, 0, 1, 0], [], []>} : vector<8x8xbf16>, vector<8x8xbf16>, vector<8x8xf32> -> vector<8x8xf32>
    %58 = vector.extract_strided_slice %42 {offsets = [0, 24], sizes = [8, 8], strides = [1, 1]} : vector<16x96xf32> to vector<8x8xf32>
    %59 = arith.truncf %58 : vector<8x8xf32> to vector<8x8xbf16>
    %60 = vector.extract_strided_slice %42 {offsets = [0, 56], sizes = [8, 8], strides = [1, 1]} : vector<16x96xf32> to vector<8x8xf32>
    %61 = arith.truncf %60 : vector<8x8xf32> to vector<8x8xbf16>
    %cst_22 = arith.constant dense<0.000000e+00> : vector<8x8xf32>
    %62 = tpu.matmul %59, %61, %cst_22 {dimension_numbers = #tpu.dot_dimension_numbers<[1], [1], [0], [0], [0, 0, 1, 0], [], []>} : vector<8x8xbf16>, vector<8x8xbf16>, vector<8x8xf32> -> vector<8x8xf32>
    %63 = vector.extract_strided_slice %42 {offsets = [8, 0], sizes = [8, 8], strides = [1, 1]} : vector<16x96xf32> to vector<8x8xf32>
    %64 = arith.truncf %63 : vector<8x8xf32> to vector<8x8xbf16>
    %65 = vector.extract_strided_slice %42 {offsets = [8, 32], sizes = [8, 8], strides = [1, 1]} : vector<16x96xf32> to vector<8x8xf32>
    %66 = arith.truncf %65 : vector<8x8xf32> to vector<8x8xbf16>
    %cst_23 = arith.constant dense<0.000000e+00> : vector<8x8xf32>
    %67 = tpu.matmul %64, %66, %cst_23 {dimension_numbers = #tpu.dot_dimension_numbers<[1], [1], [0], [0], [0, 0, 1, 0], [], []>} : vector<8x8xbf16>, vector<8x8xbf16>, vector<8x8xf32> -> vector<8x8xf32>
    %68 = vector.extract_strided_slice %42 {offsets = [8, 8], sizes = [8, 8], strides = [1, 1]} : vector<16x96xf32> to vector<8x8xf32>
    %69 = arith.truncf %68 : vector<8x8xf32> to vector<8x8xbf16>
    %70 = vector.extract_strided_slice %42 {offsets = [8, 40], sizes = [8, 8], strides = [1, 1]} : vector<16x96xf32> to vector<8x8xf32>
    %71 = arith.truncf %70 : vector<8x8xf32> to vector<8x8xbf16>
    %cst_24 = arith.constant dense<0.000000e+00> : vector<8x8xf32>
    %72 = tpu.matmul %69, %71, %cst_24 {dimension_numbers = #tpu.dot_dimension_numbers<[1], [1], [0], [0], [0, 0, 1, 0], [], []>} : vector<8x8xbf16>, vector<8x8xbf16>, vector<8x8xf32> -> vector<8x8xf32>
    %73 = vector.extract_strided_slice %42 {offsets = [8, 16], sizes = [8, 8], strides = [1, 1]} : vector<16x96xf32> to vector<8x8xf32>
    %74 = arith.truncf %73 : vector<8x8xf32> to vector<8x8xbf16>
    %75 = vector.extract_strided_slice %42 {offsets = [8, 48], sizes = [8, 8], strides = [1, 1]} : vector<16x96xf32> to vector<8x8xf32>
    %76 = arith.truncf %75 : vector<8x8xf32> to vector<8x8xbf16>
    %cst_25 = arith.constant dense<0.000000e+00> : vector<8x8xf32>
    %77 = tpu.matmul %74, %76, %cst_25 {dimension_numbers = #tpu.dot_dimension_numbers<[1], [1], [0], [0], [0, 0, 1, 0], [], []>} : vector<8x8xbf16>, vector<8x8xbf16>, vector<8x8xf32> -> vector<8x8xf32>
    %78 = vector.extract_strided_slice %42 {offsets = [8, 24], sizes = [8, 8], strides = [1, 1]} : vector<16x96xf32> to vector<8x8xf32>
    %79 = arith.truncf %78 : vector<8x8xf32> to vector<8x8xbf16>
    %80 = vector.extract_strided_slice %42 {offsets = [8, 56], sizes = [8, 8], strides = [1, 1]} : vector<16x96xf32> to vector<8x8xf32>
    %81 = arith.truncf %80 : vector<8x8xf32> to vector<8x8xbf16>
    %cst_26 = arith.constant dense<0.000000e+00> : vector<8x8xf32>
    %82 = tpu.matmul %79, %81, %cst_26 {dimension_numbers = #tpu.dot_dimension_numbers<[1], [1], [0], [0], [0, 0, 1, 0], [], []>} : vector<8x8xbf16>, vector<8x8xbf16>, vector<8x8xf32> -> vector<8x8xf32>
    %83 = tpu.concatenate %47, %52, %57, %62, %67, %72, %77, %82 in 0 : vector<8x8xf32>, vector<8x8xf32>, vector<8x8xf32>, vector<8x8xf32>, vector<8x8xf32>, vector<8x8xf32>, vector<8x8xf32>, vector<8x8xf32> -> vector<64x8xf32>
    %84 = arith.addf %83, %34 : vector<64x8xf32>
    %cst_27 = arith.constant dense<0xFF800000> : vector<64xf32>
    %85 = vector.multi_reduction <maximumf>, %84, %cst_27 [1] : vector<64x8xf32> to vector<64xf32>
    %86 = vector.shape_cast %85 : vector<64xf32> to vector<64x1xf32>
    %87 = vector.broadcast %86 : vector<64x1xf32> to vector<64x8xf32>
    %88 = arith.subf %84, %87 : vector<64x8xf32>
    %89 = math.exp %88 : vector<64x8xf32>
    %cst_28 = arith.constant dense<0.000000e+00> : vector<64xf32>
    %90 = vector.multi_reduction <add>, %89, %cst_28 [1] : vector<64x8xf32> to vector<64xf32>
    %91 = vector.shape_cast %90 : vector<64xf32> to vector<64x1xf32>
    %92 = tpu.reciprocal %91 {approx = true} : vector<64x1xf32> -> vector<64x1xf32>
    %93 = vector.broadcast %92 : vector<64x1xf32> to vector<64x8xf32>
    %94 = arith.mulf %89, %93 : vector<64x8xf32>
    %95 = arith.truncf %94 : vector<64x8xf32> to vector<64x8xbf16>
    %96 = vector.extract_strided_slice %42 {offsets = [0, 64], sizes = [8, 8], strides = [1, 1]} : vector<16x96xf32> to vector<8x8xf32>
    %97 = arith.truncf %96 : vector<8x8xf32> to vector<8x8xbf16>
    %98 = vector.extract_strided_slice %95 {offsets = [0, 0], sizes = [8, 8], strides = [1, 1]} : vector<64x8xbf16> to vector<8x8xbf16>
    %cst_29 = arith.constant dense<0.000000e+00> : vector<8x8xf32>
    %99 = tpu.matmul %98, %97, %cst_29 {dimension_numbers = #tpu.dot_dimension_numbers<[1], [0], [0], [1], [0, 0, 1, 1], [], []>} : vector<8x8xbf16>, vector<8x8xbf16>, vector<8x8xf32> -> vector<8x8xf32>
    %100 = vector.extract_strided_slice %42 {offsets = [0, 72], sizes = [8, 8], strides = [1, 1]} : vector<16x96xf32> to vector<8x8xf32>
    %101 = arith.truncf %100 : vector<8x8xf32> to vector<8x8xbf16>
    %102 = vector.extract_strided_slice %95 {offsets = [8, 0], sizes = [8, 8], strides = [1, 1]} : vector<64x8xbf16> to vector<8x8xbf16>
    %cst_30 = arith.constant dense<0.000000e+00> : vector<8x8xf32>
    %103 = tpu.matmul %102, %101, %cst_30 {dimension_numbers = #tpu.dot_dimension_numbers<[1], [0], [0], [1], [0, 0, 1, 1], [], []>} : vector<8x8xbf16>, vector<8x8xbf16>, vector<8x8xf32> -> vector<8x8xf32>
    %104 = vector.extract_strided_slice %42 {offsets = [0, 80], sizes = [8, 8], strides = [1, 1]} : vector<16x96xf32> to vector<8x8xf32>
    %105 = arith.truncf %104 : vector<8x8xf32> to vector<8x8xbf16>
    %106 = vector.extract_strided_slice %95 {offsets = [16, 0], sizes = [8, 8], strides = [1, 1]} : vector<64x8xbf16> to vector<8x8xbf16>
    %cst_31 = arith.constant dense<0.000000e+00> : vector<8x8xf32>
    %107 = tpu.matmul %106, %105, %cst_31 {dimension_numbers = #tpu.dot_dimension_numbers<[1], [0], [0], [1], [0, 0, 1, 1], [], []>} : vector<8x8xbf16>, vector<8x8xbf16>, vector<8x8xf32> -> vector<8x8xf32>
    %108 = vector.extract_strided_slice %42 {offsets = [0, 88], sizes = [8, 8], strides = [1, 1]} : vector<16x96xf32> to vector<8x8xf32>
    %109 = arith.truncf %108 : vector<8x8xf32> to vector<8x8xbf16>
    %110 = vector.extract_strided_slice %95 {offsets = [24, 0], sizes = [8, 8], strides = [1, 1]} : vector<64x8xbf16> to vector<8x8xbf16>
    %cst_32 = arith.constant dense<0.000000e+00> : vector<8x8xf32>
    %111 = tpu.matmul %110, %109, %cst_32 {dimension_numbers = #tpu.dot_dimension_numbers<[1], [0], [0], [1], [0, 0, 1, 1], [], []>} : vector<8x8xbf16>, vector<8x8xbf16>, vector<8x8xf32> -> vector<8x8xf32>
    %112 = tpu.concatenate %99, %103, %107, %111 in 1 : vector<8x8xf32>, vector<8x8xf32>, vector<8x8xf32>, vector<8x8xf32> -> vector<8x32xf32>
    %113 = vector.extract_strided_slice %42 {offsets = [8, 64], sizes = [8, 8], strides = [1, 1]} : vector<16x96xf32> to vector<8x8xf32>
    %114 = arith.truncf %113 : vector<8x8xf32> to vector<8x8xbf16>
    %115 = vector.extract_strided_slice %95 {offsets = [32, 0], sizes = [8, 8], strides = [1, 1]} : vector<64x8xbf16> to vector<8x8xbf16>
    %cst_33 = arith.constant dense<0.000000e+00> : vector<8x8xf32>
    %116 = tpu.matmul %115, %114, %cst_33 {dimension_numbers = #tpu.dot_dimension_numbers<[1], [0], [0], [1], [0, 0, 1, 1], [], []>} : vector<8x8xbf16>, vector<8x8xbf16>, vector<8x8xf32> -> vector<8x8xf32>
    %117 = vector.extract_strided_slice %42 {offsets = [8, 72], sizes = [8, 8], strides = [1, 1]} : vector<16x96xf32> to vector<8x8xf32>
    %118 = arith.truncf %117 : vector<8x8xf32> to vector<8x8xbf16>
    %119 = vector.extract_strided_slice %95 {offsets = [40, 0], sizes = [8, 8], strides = [1, 1]} : vector<64x8xbf16> to vector<8x8xbf16>
    %cst_34 = arith.constant dense<0.000000e+00> : vector<8x8xf32>
    %120 = tpu.matmul %119, %118, %cst_34 {dimension_numbers = #tpu.dot_dimension_numbers<[1], [0], [0], [1], [0, 0, 1, 1], [], []>} : vector<8x8xbf16>, vector<8x8xbf16>, vector<8x8xf32> -> vector<8x8xf32>
    %121 = vector.extract_strided_slice %42 {offsets = [8, 80], sizes = [8, 8], strides = [1, 1]} : vector<16x96xf32> to vector<8x8xf32>
    %122 = arith.truncf %121 : vector<8x8xf32> to vector<8x8xbf16>
    %123 = vector.extract_strided_slice %95 {offsets = [48, 0], sizes = [8, 8], strides = [1, 1]} : vector<64x8xbf16> to vector<8x8xbf16>
    %cst_35 = arith.constant dense<0.000000e+00> : vector<8x8xf32>
    %124 = tpu.matmul %123, %122, %cst_35 {dimension_numbers = #tpu.dot_dimension_numbers<[1], [0], [0], [1], [0, 0, 1, 1], [], []>} : vector<8x8xbf16>, vector<8x8xbf16>, vector<8x8xf32> -> vector<8x8xf32>
    %125 = vector.extract_strided_slice %42 {offsets = [8, 88], sizes = [8, 8], strides = [1, 1]} : vector<16x96xf32> to vector<8x8xf32>
    %126 = arith.truncf %125 : vector<8x8xf32> to vector<8x8xbf16>
    %127 = vector.extract_strided_slice %95 {offsets = [56, 0], sizes = [8, 8], strides = [1, 1]} : vector<64x8xbf16> to vector<8x8xbf16>
    %cst_36 = arith.constant dense<0.000000e+00> : vector<8x8xf32>
    %128 = tpu.matmul %127, %126, %cst_36 {dimension_numbers = #tpu.dot_dimension_numbers<[1], [0], [0], [1], [0, 0, 1, 1], [], []>} : vector<8x8xbf16>, vector<8x8xbf16>, vector<8x8xf32> -> vector<8x8xf32>
    %129 = tpu.concatenate %116, %120, %124, %128 in 1 : vector<8x8xf32>, vector<8x8xf32>, vector<8x8xf32>, vector<8x8xf32> -> vector<8x32xf32>
    %130 = tpu.concatenate %112, %129 in 0 : vector<8x32xf32>, vector<8x32xf32> -> vector<16x32xf32>
    %c0_37 = arith.constant 0 : index
    %c0_38 = arith.constant 0 : index
    %c0_39 = arith.constant 0 : index
    %131 = vector.load %arg7[%c0_37, %c0_38, %c0_39] : memref<2x32x32xbf16, #tpu.memory_space<vmem>>, vector<1x32x32xbf16>
    %132 = vector.shape_cast %131 : vector<1x32x32xbf16> to vector<32x32xbf16>
    %133 = arith.truncf %130 : vector<16x32xf32> to vector<16x32xbf16>
    %cst_40 = arith.constant dense<0.000000e+00> : vector<16x32xf32>
    %134 = tpu.matmul %133, %132, %cst_40 {dimension_numbers = #tpu.dot_dimension_numbers<[1], [0], [0], [1], [0, 0, 1, 1], [], []>} : vector<16x32xbf16>, vector<32x32xbf16>, vector<16x32xf32> -> vector<16x32xf32>
    %c0_41 = arith.constant 0 : index
    %c0_42 = arith.constant 0 : index
    %c0_43 = arith.constant 0 : index
    %135 = vector.load %arg8[%c0_41, %c0_42, %c0_43] : memref<2x1x32xf32, #tpu.memory_space<vmem>>, vector<1x1x32xf32>
    %136 = vector.shape_cast %135 : vector<1x1x32xf32> to vector<1x32xf32>
    %137 = vector.broadcast %136 : vector<1x32xf32> to vector<16x32xf32>
    %138 = arith.addf %134, %137 : vector<16x32xf32>
    %139 = arith.addf %24, %138 : vector<16x32xf32>
    %c0_44 = arith.constant 0 : index
    %c0_45 = arith.constant 0 : index
    %c0_46 = arith.constant 0 : index
    %140 = vector.load %arg9[%c0_44, %c0_45, %c0_46] : memref<2x1x32xf32, #tpu.memory_space<vmem>>, vector<1x1x32xf32>
    %141 = vector.shape_cast %140 : vector<1x1x32xf32> to vector<1x32xf32>
    %c0_47 = arith.constant 0 : index
    %c0_48 = arith.constant 0 : index
    %c0_49 = arith.constant 0 : index
    %142 = vector.load %arg10[%c0_47, %c0_48, %c0_49] : memref<2x1x32xf32, #tpu.memory_space<vmem>>, vector<1x1x32xf32>
    %143 = vector.shape_cast %142 : vector<1x1x32xf32> to vector<1x32xf32>
    %cst_50 = arith.constant dense<0.000000e+00> : vector<16xf32>
    %144 = vector.multi_reduction <add>, %139, %cst_50 [1] : vector<16x32xf32> to vector<16xf32>
    %145 = vector.shape_cast %144 : vector<16xf32> to vector<16x1xf32>
    %cst_51 = arith.constant 3.200000e+01 : f32
    %146 = vector.broadcast %cst_51 : f32 to vector<16x1xf32>
    %147 = arith.divf %145, %146 : vector<16x1xf32>
    %148 = vector.broadcast %147 : vector<16x1xf32> to vector<16x32xf32>
    %149 = arith.subf %139, %148 : vector<16x32xf32>
    %150 = arith.mulf %149, %149 : vector<16x32xf32>
    %cst_52 = arith.constant dense<0.000000e+00> : vector<16xf32>
    %151 = vector.multi_reduction <add>, %150, %cst_52 [1] : vector<16x32xf32> to vector<16xf32>
    %152 = vector.shape_cast %151 : vector<16xf32> to vector<16x1xf32>
    %cst_53 = arith.constant 3.200000e+01 : f32
    %153 = vector.broadcast %cst_53 : f32 to vector<16x1xf32>
    %154 = arith.divf %152, %153 : vector<16x1xf32>
    %155 = vector.broadcast %147 : vector<16x1xf32> to vector<16x32xf32>
    %156 = arith.subf %139, %155 : vector<16x32xf32>
    %cst_54 = arith.constant 9.99999996E-13 : f32
    %157 = vector.broadcast %cst_54 : f32 to vector<16x1xf32>
    %158 = arith.addf %154, %157 : vector<16x1xf32>
    %159 = math.rsqrt %158 : vector<16x1xf32>
    %160 = vector.broadcast %159 : vector<16x1xf32> to vector<16x32xf32>
    %161 = arith.mulf %156, %160 : vector<16x32xf32>
    %162 = vector.broadcast %141 : vector<1x32xf32> to vector<16x32xf32>
    %163 = arith.mulf %161, %162 : vector<16x32xf32>
    %164 = vector.broadcast %143 : vector<1x32xf32> to vector<16x32xf32>
    %165 = arith.addf %163, %164 : vector<16x32xf32>
    %c0_55 = arith.constant 0 : index
    %c0_56 = arith.constant 0 : index
    %c0_57 = arith.constant 0 : index
    %166 = vector.load %arg11[%c0_55, %c0_56, %c0_57] : memref<2x32x64xbf16, #tpu.memory_space<vmem>>, vector<1x32x64xbf16>
    %167 = vector.shape_cast %166 : vector<1x32x64xbf16> to vector<32x64xbf16>
    %168 = arith.truncf %165 : vector<16x32xf32> to vector<16x32xbf16>
    %cst_58 = arith.constant dense<0.000000e+00> : vector<16x64xf32>
    %169 = tpu.matmul %168, %167, %cst_58 {dimension_numbers = #tpu.dot_dimension_numbers<[1], [0], [0], [1], [0, 0, 1, 1], [], []>} : vector<16x32xbf16>, vector<32x64xbf16>, vector<16x64xf32> -> vector<16x64xf32>
    %c0_59 = arith.constant 0 : index
    %c0_60 = arith.constant 0 : index
    %c0_61 = arith.constant 0 : index
    %170 = vector.load %arg12[%c0_59, %c0_60, %c0_61] : memref<2x1x64xf32, #tpu.memory_space<vmem>>, vector<1x1x64xf32>
    %171 = vector.shape_cast %170 : vector<1x1x64xf32> to vector<1x64xf32>
    %172 = vector.broadcast %171 : vector<1x64xf32> to vector<16x64xf32>
    %173 = arith.addf %169, %172 : vector<16x64xf32>
    %174 = arith.mulf %173, %173 : vector<16x64xf32>
    %175 = arith.mulf %173, %174 : vector<16x64xf32>
    %cst_62 = arith.constant 4.471500e-02 : f32
    %176 = vector.broadcast %cst_62 : f32 to vector<16x64xf32>
    %177 = arith.mulf %176, %175 : vector<16x64xf32>
    %178 = arith.addf %173, %177 : vector<16x64xf32>
    %cst_63 = arith.constant 0.797884583 : f32
    %179 = vector.broadcast %cst_63 : f32 to vector<16x64xf32>
    %180 = arith.mulf %179, %178 : vector<16x64xf32>
    %181 = math.tanh %180 : vector<16x64xf32>
    %cst_64 = arith.constant 1.000000e+00 : f32
    %182 = vector.broadcast %cst_64 : f32 to vector<16x64xf32>
    %183 = arith.addf %182, %181 : vector<16x64xf32>
    %cst_65 = arith.constant 5.000000e-01 : f32
    %184 = vector.broadcast %cst_65 : f32 to vector<16x64xf32>
    %185 = arith.mulf %184, %183 : vector<16x64xf32>
    %186 = arith.mulf %173, %185 : vector<16x64xf32>
    %c0_66 = arith.constant 0 : index
    %c0_67 = arith.constant 0 : index
    %c0_68 = arith.constant 0 : index
    %187 = vector.load %arg13[%c0_66, %c0_67, %c0_68] : memref<2x64x32xbf16, #tpu.memory_space<vmem>>, vector<1x64x32xbf16>
    %188 = vector.shape_cast %187 : vector<1x64x32xbf16> to vector<64x32xbf16>
    %189 = arith.truncf %186 : vector<16x64xf32> to vector<16x64xbf16>
    %cst_69 = arith.constant dense<0.000000e+00> : vector<16x32xf32>
    %190 = tpu.matmul %189, %188, %cst_69 {dimension_numbers = #tpu.dot_dimension_numbers<[1], [0], [0], [1], [0, 0, 1, 1], [], []>} : vector<16x64xbf16>, vector<64x32xbf16>, vector<16x32xf32> -> vector<16x32xf32>
    %c0_70 = arith.constant 0 : index
    %c0_71 = arith.constant 0 : index
    %c0_72 = arith.constant 0 : index
    %191 = vector.load %arg14[%c0_70, %c0_71, %c0_72] : memref<2x1x32xf32, #tpu.memory_space<vmem>>, vector<1x1x32xf32>
    %192 = vector.shape_cast %191 : vector<1x1x32xf32> to vector<1x32xf32>
    %193 = vector.broadcast %192 : vector<1x32xf32> to vector<16x32xf32>
    %194 = arith.addf %190, %193 : vector<16x32xf32>
    %195 = arith.addf %165, %194 : vector<16x32xf32>
    %c0_73 = arith.constant 0 : index
    %c0_74 = arith.constant 0 : index
    %c0_75 = arith.constant 0 : index
    %196 = vector.load %arg15[%c0_73, %c0_74, %c0_75] : memref<2x1x32xf32, #tpu.memory_space<vmem>>, vector<1x1x32xf32>
    %197 = vector.shape_cast %196 : vector<1x1x32xf32> to vector<1x32xf32>
    %c0_76 = arith.constant 0 : index
    %c0_77 = arith.constant 0 : index
    %c0_78 = arith.constant 0 : index
    %198 = vector.load %arg16[%c0_76, %c0_77, %c0_78] : memref<2x1x32xf32, #tpu.memory_space<vmem>>, vector<1x1x32xf32>
    %199 = vector.shape_cast %198 : vector<1x1x32xf32> to vector<1x32xf32>
    %cst_79 = arith.constant dense<0.000000e+00> : vector<16xf32>
    %200 = vector.multi_reduction <add>, %195, %cst_79 [1] : vector<16x32xf32> to vector<16xf32>
    %201 = vector.shape_cast %200 : vector<16xf32> to vector<16x1xf32>
    %cst_80 = arith.constant 3.200000e+01 : f32
    %202 = vector.broadcast %cst_80 : f32 to vector<16x1xf32>
    %203 = arith.divf %201, %202 : vector<16x1xf32>
    %204 = vector.broadcast %203 : vector<16x1xf32> to vector<16x32xf32>
    %205 = arith.subf %195, %204 : vector<16x32xf32>
    %206 = arith.mulf %205, %205 : vector<16x32xf32>
    %cst_81 = arith.constant dense<0.000000e+00> : vector<16xf32>
    %207 = vector.multi_reduction <add>, %206, %cst_81 [1] : vector<16x32xf32> to vector<16xf32>
    %208 = vector.shape_cast %207 : vector<16xf32> to vector<16x1xf32>
    %cst_82 = arith.constant 3.200000e+01 : f32
    %209 = vector.broadcast %cst_82 : f32 to vector<16x1xf32>
    %210 = arith.divf %208, %209 : vector<16x1xf32>
    %211 = vector.broadcast %203 : vector<16x1xf32> to vector<16x32xf32>
    %212 = arith.subf %195, %211 : vector<16x32xf32>
    %cst_83 = arith.constant 9.99999996E-13 : f32
    %213 = vector.broadcast %cst_83 : f32 to vector<16x1xf32>
    %214 = arith.addf %210, %213 : vector<16x1xf32>
    %215 = math.rsqrt %214 : vector<16x1xf32>
    %216 = vector.broadcast %215 : vector<16x1xf32> to vector<16x32xf32>
    %217 = arith.mulf %212, %216 : vector<16x32xf32>
    %218 = vector.broadcast %197 : vector<1x32xf32> to vector<16x32xf32>
    %219 = arith.mulf %217, %218 : vector<16x32xf32>
    %220 = vector.broadcast %199 : vector<1x32xf32> to vector<16x32xf32>
    %221 = arith.addf %219, %220 : vector<16x32xf32>
    %c1 = arith.constant 1 : index
    %c0_84 = arith.constant 0 : index
    %c0_85 = arith.constant 0 : index
    %222 = vector.load %arg5[%c1, %c0_84, %c0_85] : memref<2x32x96xbf16, #tpu.memory_space<vmem>>, vector<1x32x96xbf16>
    %223 = vector.shape_cast %222 : vector<1x32x96xbf16> to vector<32x96xbf16>
    %224 = arith.truncf %221 : vector<16x32xf32> to vector<16x32xbf16>
    %cst_86 = arith.constant dense<0.000000e+00> : vector<16x96xf32>
    %225 = tpu.matmul %224, %223, %cst_86 {dimension_numbers = #tpu.dot_dimension_numbers<[1], [0], [0], [1], [0, 0, 1, 1], [], []>} : vector<16x32xbf16>, vector<32x96xbf16>, vector<16x96xf32> -> vector<16x96xf32>
    %c1_87 = arith.constant 1 : index
    %c0_88 = arith.constant 0 : index
    %c0_89 = arith.constant 0 : index
    %226 = vector.load %arg6[%c1_87, %c0_88, %c0_89] : memref<2x1x96xf32, #tpu.memory_space<vmem>>, vector<1x1x96xf32>
    %227 = vector.shape_cast %226 : vector<1x1x96xf32> to vector<1x96xf32>
    %228 = vector.broadcast %227 : vector<1x96xf32> to vector<16x96xf32>
    %229 = arith.addf %225, %228 : vector<16x96xf32>
    %230 = vector.extract_strided_slice %229 {offsets = [0, 0], sizes = [8, 8], strides = [1, 1]} : vector<16x96xf32> to vector<8x8xf32>
    %231 = arith.truncf %230 : vector<8x8xf32> to vector<8x8xbf16>
    %232 = vector.extract_strided_slice %229 {offsets = [0, 32], sizes = [8, 8], strides = [1, 1]} : vector<16x96xf32> to vector<8x8xf32>
    %233 = arith.truncf %232 : vector<8x8xf32> to vector<8x8xbf16>
    %cst_90 = arith.constant dense<0.000000e+00> : vector<8x8xf32>
    %234 = tpu.matmul %231, %233, %cst_90 {dimension_numbers = #tpu.dot_dimension_numbers<[1], [1], [0], [0], [0, 0, 1, 0], [], []>} : vector<8x8xbf16>, vector<8x8xbf16>, vector<8x8xf32> -> vector<8x8xf32>
    %235 = vector.extract_strided_slice %229 {offsets = [0, 8], sizes = [8, 8], strides = [1, 1]} : vector<16x96xf32> to vector<8x8xf32>
    %236 = arith.truncf %235 : vector<8x8xf32> to vector<8x8xbf16>
    %237 = vector.extract_strided_slice %229 {offsets = [0, 40], sizes = [8, 8], strides = [1, 1]} : vector<16x96xf32> to vector<8x8xf32>
    %238 = arith.truncf %237 : vector<8x8xf32> to vector<8x8xbf16>
    %cst_91 = arith.constant dense<0.000000e+00> : vector<8x8xf32>
    %239 = tpu.matmul %236, %238, %cst_91 {dimension_numbers = #tpu.dot_dimension_numbers<[1], [1], [0], [0], [0, 0, 1, 0], [], []>} : vector<8x8xbf16>, vector<8x8xbf16>, vector<8x8xf32> -> vector<8x8xf32>
    %240 = vector.extract_strided_slice %229 {offsets = [0, 16], sizes = [8, 8], strides = [1, 1]} : vector<16x96xf32> to vector<8x8xf32>
    %241 = arith.truncf %240 : vector<8x8xf32> to vector<8x8xbf16>
    %242 = vector.extract_strided_slice %229 {offsets = [0, 48], sizes = [8, 8], strides = [1, 1]} : vector<16x96xf32> to vector<8x8xf32>
    %243 = arith.truncf %242 : vector<8x8xf32> to vector<8x8xbf16>
    %cst_92 = arith.constant dense<0.000000e+00> : vector<8x8xf32>
    %244 = tpu.matmul %241, %243, %cst_92 {dimension_numbers = #tpu.dot_dimension_numbers<[1], [1], [0], [0], [0, 0, 1, 0], [], []>} : vector<8x8xbf16>, vector<8x8xbf16>, vector<8x8xf32> -> vector<8x8xf32>
    %245 = vector.extract_strided_slice %229 {offsets = [0, 24], sizes = [8, 8], strides = [1, 1]} : vector<16x96xf32> to vector<8x8xf32>
    %246 = arith.truncf %245 : vector<8x8xf32> to vector<8x8xbf16>
    %247 = vector.extract_strided_slice %229 {offsets = [0, 56], sizes = [8, 8], strides = [1, 1]} : vector<16x96xf32> to vector<8x8xf32>
    %248 = arith.truncf %247 : vector<8x8xf32> to vector<8x8xbf16>
    %cst_93 = arith.constant dense<0.000000e+00> : vector<8x8xf32>
    %249 = tpu.matmul %246, %248, %cst_93 {dimension_numbers = #tpu.dot_dimension_numbers<[1], [1], [0], [0], [0, 0, 1, 0], [], []>} : vector<8x8xbf16>, vector<8x8xbf16>, vector<8x8xf32> -> vector<8x8xf32>
    %250 = vector.extract_strided_slice %229 {offsets = [8, 0], sizes = [8, 8], strides = [1, 1]} : vector<16x96xf32> to vector<8x8xf32>
    %251 = arith.truncf %250 : vector<8x8xf32> to vector<8x8xbf16>
    %252 = vector.extract_strided_slice %229 {offsets = [8, 32], sizes = [8, 8], strides = [1, 1]} : vector<16x96xf32> to vector<8x8xf32>
    %253 = arith.truncf %252 : vector<8x8xf32> to vector<8x8xbf16>
    %cst_94 = arith.constant dense<0.000000e+00> : vector<8x8xf32>
    %254 = tpu.matmul %251, %253, %cst_94 {dimension_numbers = #tpu.dot_dimension_numbers<[1], [1], [0], [0], [0, 0, 1, 0], [], []>} : vector<8x8xbf16>, vector<8x8xbf16>, vector<8x8xf32> -> vector<8x8xf32>
    %255 = vector.extract_strided_slice %229 {offsets = [8, 8], sizes = [8, 8], strides = [1, 1]} : vector<16x96xf32> to vector<8x8xf32>
    %256 = arith.truncf %255 : vector<8x8xf32> to vector<8x8xbf16>
    %257 = vector.extract_strided_slice %229 {offsets = [8, 40], sizes = [8, 8], strides = [1, 1]} : vector<16x96xf32> to vector<8x8xf32>
    %258 = arith.truncf %257 : vector<8x8xf32> to vector<8x8xbf16>
    %cst_95 = arith.constant dense<0.000000e+00> : vector<8x8xf32>
    %259 = tpu.matmul %256, %258, %cst_95 {dimension_numbers = #tpu.dot_dimension_numbers<[1], [1], [0], [0], [0, 0, 1, 0], [], []>} : vector<8x8xbf16>, vector<8x8xbf16>, vector<8x8xf32> -> vector<8x8xf32>
    %260 = vector.extract_strided_slice %229 {offsets = [8, 16], sizes = [8, 8], strides = [1, 1]} : vector<16x96xf32> to vector<8x8xf32>
    %261 = arith.truncf %260 : vector<8x8xf32> to vector<8x8xbf16>
    %262 = vector.extract_strided_slice %229 {offsets = [8, 48], sizes = [8, 8], strides = [1, 1]} : vector<16x96xf32> to vector<8x8xf32>
    %263 = arith.truncf %262 : vector<8x8xf32> to vector<8x8xbf16>
    %cst_96 = arith.constant dense<0.000000e+00> : vector<8x8xf32>
    %264 = tpu.matmul %261, %263, %cst_96 {dimension_numbers = #tpu.dot_dimension_numbers<[1], [1], [0], [0], [0, 0, 1, 0], [], []>} : vector<8x8xbf16>, vector<8x8xbf16>, vector<8x8xf32> -> vector<8x8xf32>
    %265 = vector.extract_strided_slice %229 {offsets = [8, 24], sizes = [8, 8], strides = [1, 1]} : vector<16x96xf32> to vector<8x8xf32>
    %266 = arith.truncf %265 : vector<8x8xf32> to vector<8x8xbf16>
    %267 = vector.extract_strided_slice %229 {offsets = [8, 56], sizes = [8, 8], strides = [1, 1]} : vector<16x96xf32> to vector<8x8xf32>
    %268 = arith.truncf %267 : vector<8x8xf32> to vector<8x8xbf16>
    %cst_97 = arith.constant dense<0.000000e+00> : vector<8x8xf32>
    %269 = tpu.matmul %266, %268, %cst_97 {dimension_numbers = #tpu.dot_dimension_numbers<[1], [1], [0], [0], [0, 0, 1, 0], [], []>} : vector<8x8xbf16>, vector<8x8xbf16>, vector<8x8xf32> -> vector<8x8xf32>
    %270 = tpu.concatenate %234, %239, %244, %249, %254, %259, %264, %269 in 0 : vector<8x8xf32>, vector<8x8xf32>, vector<8x8xf32>, vector<8x8xf32>, vector<8x8xf32>, vector<8x8xf32>, vector<8x8xf32>, vector<8x8xf32> -> vector<64x8xf32>
    %271 = arith.addf %270, %34 : vector<64x8xf32>
    %cst_98 = arith.constant dense<0xFF800000> : vector<64xf32>
    %272 = vector.multi_reduction <maximumf>, %271, %cst_98 [1] : vector<64x8xf32> to vector<64xf32>
    %273 = vector.shape_cast %272 : vector<64xf32> to vector<64x1xf32>
    %274 = vector.broadcast %273 : vector<64x1xf32> to vector<64x8xf32>
    %275 = arith.subf %271, %274 : vector<64x8xf32>
    %276 = math.exp %275 : vector<64x8xf32>
    %cst_99 = arith.constant dense<0.000000e+00> : vector<64xf32>
    %277 = vector.multi_reduction <add>, %276, %cst_99 [1] : vector<64x8xf32> to vector<64xf32>
    %278 = vector.shape_cast %277 : vector<64xf32> to vector<64x1xf32>
    %279 = tpu.reciprocal %278 {approx = true} : vector<64x1xf32> -> vector<64x1xf32>
    %280 = vector.broadcast %279 : vector<64x1xf32> to vector<64x8xf32>
    %281 = arith.mulf %276, %280 : vector<64x8xf32>
    %282 = arith.truncf %281 : vector<64x8xf32> to vector<64x8xbf16>
    %283 = vector.extract_strided_slice %229 {offsets = [0, 64], sizes = [8, 8], strides = [1, 1]} : vector<16x96xf32> to vector<8x8xf32>
    %284 = arith.truncf %283 : vector<8x8xf32> to vector<8x8xbf16>
    %285 = vector.extract_strided_slice %282 {offsets = [0, 0], sizes = [8, 8], strides = [1, 1]} : vector<64x8xbf16> to vector<8x8xbf16>
    %cst_100 = arith.constant dense<0.000000e+00> : vector<8x8xf32>
    %286 = tpu.matmul %285, %284, %cst_100 {dimension_numbers = #tpu.dot_dimension_numbers<[1], [0], [0], [1], [0, 0, 1, 1], [], []>} : vector<8x8xbf16>, vector<8x8xbf16>, vector<8x8xf32> -> vector<8x8xf32>
    %287 = vector.extract_strided_slice %229 {offsets = [0, 72], sizes = [8, 8], strides = [1, 1]} : vector<16x96xf32> to vector<8x8xf32>
    %288 = arith.truncf %287 : vector<8x8xf32> to vector<8x8xbf16>
    %289 = vector.extract_strided_slice %282 {offsets = [8, 0], sizes = [8, 8], strides = [1, 1]} : vector<64x8xbf16> to vector<8x8xbf16>
    %cst_101 = arith.constant dense<0.000000e+00> : vector<8x8xf32>
    %290 = tpu.matmul %289, %288, %cst_101 {dimension_numbers = #tpu.dot_dimension_numbers<[1], [0], [0], [1], [0, 0, 1, 1], [], []>} : vector<8x8xbf16>, vector<8x8xbf16>, vector<8x8xf32> -> vector<8x8xf32>
    %291 = vector.extract_strided_slice %229 {offsets = [0, 80], sizes = [8, 8], strides = [1, 1]} : vector<16x96xf32> to vector<8x8xf32>
    %292 = arith.truncf %291 : vector<8x8xf32> to vector<8x8xbf16>
    %293 = vector.extract_strided_slice %282 {offsets = [16, 0], sizes = [8, 8], strides = [1, 1]} : vector<64x8xbf16> to vector<8x8xbf16>
    %cst_102 = arith.constant dense<0.000000e+00> : vector<8x8xf32>
    %294 = tpu.matmul %293, %292, %cst_102 {dimension_numbers = #tpu.dot_dimension_numbers<[1], [0], [0], [1], [0, 0, 1, 1], [], []>} : vector<8x8xbf16>, vector<8x8xbf16>, vector<8x8xf32> -> vector<8x8xf32>
    %295 = vector.extract_strided_slice %229 {offsets = [0, 88], sizes = [8, 8], strides = [1, 1]} : vector<16x96xf32> to vector<8x8xf32>
    %296 = arith.truncf %295 : vector<8x8xf32> to vector<8x8xbf16>
    %297 = vector.extract_strided_slice %282 {offsets = [24, 0], sizes = [8, 8], strides = [1, 1]} : vector<64x8xbf16> to vector<8x8xbf16>
    %cst_103 = arith.constant dense<0.000000e+00> : vector<8x8xf32>
    %298 = tpu.matmul %297, %296, %cst_103 {dimension_numbers = #tpu.dot_dimension_numbers<[1], [0], [0], [1], [0, 0, 1, 1], [], []>} : vector<8x8xbf16>, vector<8x8xbf16>, vector<8x8xf32> -> vector<8x8xf32>
    %299 = tpu.concatenate %286, %290, %294, %298 in 1 : vector<8x8xf32>, vector<8x8xf32>, vector<8x8xf32>, vector<8x8xf32> -> vector<8x32xf32>
    %300 = vector.extract_strided_slice %229 {offsets = [8, 64], sizes = [8, 8], strides = [1, 1]} : vector<16x96xf32> to vector<8x8xf32>
    %301 = arith.truncf %300 : vector<8x8xf32> to vector<8x8xbf16>
    %302 = vector.extract_strided_slice %282 {offsets = [32, 0], sizes = [8, 8], strides = [1, 1]} : vector<64x8xbf16> to vector<8x8xbf16>
    %cst_104 = arith.constant dense<0.000000e+00> : vector<8x8xf32>
    %303 = tpu.matmul %302, %301, %cst_104 {dimension_numbers = #tpu.dot_dimension_numbers<[1], [0], [0], [1], [0, 0, 1, 1], [], []>} : vector<8x8xbf16>, vector<8x8xbf16>, vector<8x8xf32> -> vector<8x8xf32>
    %304 = vector.extract_strided_slice %229 {offsets = [8, 72], sizes = [8, 8], strides = [1, 1]} : vector<16x96xf32> to vector<8x8xf32>
    %305 = arith.truncf %304 : vector<8x8xf32> to vector<8x8xbf16>
    %306 = vector.extract_strided_slice %282 {offsets = [40, 0], sizes = [8, 8], strides = [1, 1]} : vector<64x8xbf16> to vector<8x8xbf16>
    %cst_105 = arith.constant dense<0.000000e+00> : vector<8x8xf32>
    %307 = tpu.matmul %306, %305, %cst_105 {dimension_numbers = #tpu.dot_dimension_numbers<[1], [0], [0], [1], [0, 0, 1, 1], [], []>} : vector<8x8xbf16>, vector<8x8xbf16>, vector<8x8xf32> -> vector<8x8xf32>
    %308 = vector.extract_strided_slice %229 {offsets = [8, 80], sizes = [8, 8], strides = [1, 1]} : vector<16x96xf32> to vector<8x8xf32>
    %309 = arith.truncf %308 : vector<8x8xf32> to vector<8x8xbf16>
    %310 = vector.extract_strided_slice %282 {offsets = [48, 0], sizes = [8, 8], strides = [1, 1]} : vector<64x8xbf16> to vector<8x8xbf16>
    %cst_106 = arith.constant dense<0.000000e+00> : vector<8x8xf32>
    %311 = tpu.matmul %310, %309, %cst_106 {dimension_numbers = #tpu.dot_dimension_numbers<[1], [0], [0], [1], [0, 0, 1, 1], [], []>} : vector<8x8xbf16>, vector<8x8xbf16>, vector<8x8xf32> -> vector<8x8xf32>
    %312 = vector.extract_strided_slice %229 {offsets = [8, 88], sizes = [8, 8], strides = [1, 1]} : vector<16x96xf32> to vector<8x8xf32>
    %313 = arith.truncf %312 : vector<8x8xf32> to vector<8x8xbf16>
    %314 = vector.extract_strided_slice %282 {offsets = [56, 0], sizes = [8, 8], strides = [1, 1]} : vector<64x8xbf16> to vector<8x8xbf16>
    %cst_107 = arith.constant dense<0.000000e+00> : vector<8x8xf32>
    %315 = tpu.matmul %314, %313, %cst_107 {dimension_numbers = #tpu.dot_dimension_numbers<[1], [0], [0], [1], [0, 0, 1, 1], [], []>} : vector<8x8xbf16>, vector<8x8xbf16>, vector<8x8xf32> -> vector<8x8xf32>
    %316 = tpu.concatenate %303, %307, %311, %315 in 1 : vector<8x8xf32>, vector<8x8xf32>, vector<8x8xf32>, vector<8x8xf32> -> vector<8x32xf32>
    %317 = tpu.concatenate %299, %316 in 0 : vector<8x32xf32>, vector<8x32xf32> -> vector<16x32xf32>
    %c1_108 = arith.constant 1 : index
    %c0_109 = arith.constant 0 : index
    %c0_110 = arith.constant 0 : index
    %318 = vector.load %arg7[%c1_108, %c0_109, %c0_110] : memref<2x32x32xbf16, #tpu.memory_space<vmem>>, vector<1x32x32xbf16>
    %319 = vector.shape_cast %318 : vector<1x32x32xbf16> to vector<32x32xbf16>
    %320 = arith.truncf %317 : vector<16x32xf32> to vector<16x32xbf16>
    %cst_111 = arith.constant dense<0.000000e+00> : vector<16x32xf32>
    %321 = tpu.matmul %320, %319, %cst_111 {dimension_numbers = #tpu.dot_dimension_numbers<[1], [0], [0], [1], [0, 0, 1, 1], [], []>} : vector<16x32xbf16>, vector<32x32xbf16>, vector<16x32xf32> -> vector<16x32xf32>
    %c1_112 = arith.constant 1 : index
    %c0_113 = arith.constant 0 : index
    %c0_114 = arith.constant 0 : index
    %322 = vector.load %arg8[%c1_112, %c0_113, %c0_114] : memref<2x1x32xf32, #tpu.memory_space<vmem>>, vector<1x1x32xf32>
    %323 = vector.shape_cast %322 : vector<1x1x32xf32> to vector<1x32xf32>
    %324 = vector.broadcast %323 : vector<1x32xf32> to vector<16x32xf32>
    %325 = arith.addf %321, %324 : vector<16x32xf32>
    %326 = arith.addf %221, %325 : vector<16x32xf32>
    %c1_115 = arith.constant 1 : index
    %c0_116 = arith.constant 0 : index
    %c0_117 = arith.constant 0 : index
    %327 = vector.load %arg9[%c1_115, %c0_116, %c0_117] : memref<2x1x32xf32, #tpu.memory_space<vmem>>, vector<1x1x32xf32>
    %328 = vector.shape_cast %327 : vector<1x1x32xf32> to vector<1x32xf32>
    %c1_118 = arith.constant 1 : index
    %c0_119 = arith.constant 0 : index
    %c0_120 = arith.constant 0 : index
    %329 = vector.load %arg10[%c1_118, %c0_119, %c0_120] : memref<2x1x32xf32, #tpu.memory_space<vmem>>, vector<1x1x32xf32>
    %330 = vector.shape_cast %329 : vector<1x1x32xf32> to vector<1x32xf32>
    %cst_121 = arith.constant dense<0.000000e+00> : vector<16xf32>
    %331 = vector.multi_reduction <add>, %326, %cst_121 [1] : vector<16x32xf32> to vector<16xf32>
    %332 = vector.shape_cast %331 : vector<16xf32> to vector<16x1xf32>
    %cst_122 = arith.constant 3.200000e+01 : f32
    %333 = vector.broadcast %cst_122 : f32 to vector<16x1xf32>
    %334 = arith.divf %332, %333 : vector<16x1xf32>
    %335 = vector.broadcast %334 : vector<16x1xf32> to vector<16x32xf32>
    %336 = arith.subf %326, %335 : vector<16x32xf32>
    %337 = arith.mulf %336, %336 : vector<16x32xf32>
    %cst_123 = arith.constant dense<0.000000e+00> : vector<16xf32>
    %338 = vector.multi_reduction <add>, %337, %cst_123 [1] : vector<16x32xf32> to vector<16xf32>
    %339 = vector.shape_cast %338 : vector<16xf32> to vector<16x1xf32>
    %cst_124 = arith.constant 3.200000e+01 : f32
    %340 = vector.broadcast %cst_124 : f32 to vector<16x1xf32>
    %341 = arith.divf %339, %340 : vector<16x1xf32>
    %342 = vector.broadcast %334 : vector<16x1xf32> to vector<16x32xf32>
    %343 = arith.subf %326, %342 : vector<16x32xf32>
    %cst_125 = arith.constant 9.99999996E-13 : f32
    %344 = vector.broadcast %cst_125 : f32 to vector<16x1xf32>
    %345 = arith.addf %341, %344 : vector<16x1xf32>
    %346 = math.rsqrt %345 : vector<16x1xf32>
    %347 = vector.broadcast %346 : vector<16x1xf32> to vector<16x32xf32>
    %348 = arith.mulf %343, %347 : vector<16x32xf32>
    %349 = vector.broadcast %328 : vector<1x32xf32> to vector<16x32xf32>
    %350 = arith.mulf %348, %349 : vector<16x32xf32>
    %351 = vector.broadcast %330 : vector<1x32xf32> to vector<16x32xf32>
    %352 = arith.addf %350, %351 : vector<16x32xf32>
    %c1_126 = arith.constant 1 : index
    %c0_127 = arith.constant 0 : index
    %c0_128 = arith.constant 0 : index
    %353 = vector.load %arg11[%c1_126, %c0_127, %c0_128] : memref<2x32x64xbf16, #tpu.memory_space<vmem>>, vector<1x32x64xbf16>
    %354 = vector.shape_cast %353 : vector<1x32x64xbf16> to vector<32x64xbf16>
    %355 = arith.truncf %352 : vector<16x32xf32> to vector<16x32xbf16>
    %cst_129 = arith.constant dense<0.000000e+00> : vector<16x64xf32>
    %356 = tpu.matmul %355, %354, %cst_129 {dimension_numbers = #tpu.dot_dimension_numbers<[1], [0], [0], [1], [0, 0, 1, 1], [], []>} : vector<16x32xbf16>, vector<32x64xbf16>, vector<16x64xf32> -> vector<16x64xf32>
    %c1_130 = arith.constant 1 : index
    %c0_131 = arith.constant 0 : index
    %c0_132 = arith.constant 0 : index
    %357 = vector.load %arg12[%c1_130, %c0_131, %c0_132] : memref<2x1x64xf32, #tpu.memory_space<vmem>>, vector<1x1x64xf32>
    %358 = vector.shape_cast %357 : vector<1x1x64xf32> to vector<1x64xf32>
    %359 = vector.broadcast %358 : vector<1x64xf32> to vector<16x64xf32>
    %360 = arith.addf %356, %359 : vector<16x64xf32>
    %361 = arith.mulf %360, %360 : vector<16x64xf32>
    %362 = arith.mulf %360, %361 : vector<16x64xf32>
    %cst_133 = arith.constant 4.471500e-02 : f32
    %363 = vector.broadcast %cst_133 : f32 to vector<16x64xf32>
    %364 = arith.mulf %363, %362 : vector<16x64xf32>
    %365 = arith.addf %360, %364 : vector<16x64xf32>
    %cst_134 = arith.constant 0.797884583 : f32
    %366 = vector.broadcast %cst_134 : f32 to vector<16x64xf32>
    %367 = arith.mulf %366, %365 : vector<16x64xf32>
    %368 = math.tanh %367 : vector<16x64xf32>
    %cst_135 = arith.constant 1.000000e+00 : f32
    %369 = vector.broadcast %cst_135 : f32 to vector<16x64xf32>
    %370 = arith.addf %369, %368 : vector<16x64xf32>
    %cst_136 = arith.constant 5.000000e-01 : f32
    %371 = vector.broadcast %cst_136 : f32 to vector<16x64xf32>
    %372 = arith.mulf %371, %370 : vector<16x64xf32>
    %373 = arith.mulf %360, %372 : vector<16x64xf32>
    %c1_137 = arith.constant 1 : index
    %c0_138 = arith.constant 0 : index
    %c0_139 = arith.constant 0 : index
    %374 = vector.load %arg13[%c1_137, %c0_138, %c0_139] : memref<2x64x32xbf16, #tpu.memory_space<vmem>>, vector<1x64x32xbf16>
    %375 = vector.shape_cast %374 : vector<1x64x32xbf16> to vector<64x32xbf16>
    %376 = arith.truncf %373 : vector<16x64xf32> to vector<16x64xbf16>
    %cst_140 = arith.constant dense<0.000000e+00> : vector<16x32xf32>
    %377 = tpu.matmul %376, %375, %cst_140 {dimension_numbers = #tpu.dot_dimension_numbers<[1], [0], [0], [1], [0, 0, 1, 1], [], []>} : vector<16x64xbf16>, vector<64x32xbf16>, vector<16x32xf32> -> vector<16x32xf32>
    %c1_141 = arith.constant 1 : index
    %c0_142 = arith.constant 0 : index
    %c0_143 = arith.constant 0 : index
    %378 = vector.load %arg14[%c1_141, %c0_142, %c0_143] : memref<2x1x32xf32, #tpu.memory_space<vmem>>, vector<1x1x32xf32>
    %379 = vector.shape_cast %378 : vector<1x1x32xf32> to vector<1x32xf32>
    %380 = vector.broadcast %379 : vector<1x32xf32> to vector<16x32xf32>
    %381 = arith.addf %377, %380 : vector<16x32xf32>
    %382 = arith.addf %352, %381 : vector<16x32xf32>
    %c1_144 = arith.constant 1 : index
    %c0_145 = arith.constant 0 : index
    %c0_146 = arith.constant 0 : index
    %383 = vector.load %arg15[%c1_144, %c0_145, %c0_146] : memref<2x1x32xf32, #tpu.memory_space<vmem>>, vector<1x1x32xf32>
    %384 = vector.shape_cast %383 : vector<1x1x32xf32> to vector<1x32xf32>
    %c1_147 = arith.constant 1 : index
    %c0_148 = arith.constant 0 : index
    %c0_149 = arith.constant 0 : index
    %385 = vector.load %arg16[%c1_147, %c0_148, %c0_149] : memref<2x1x32xf32, #tpu.memory_space<vmem>>, vector<1x1x32xf32>
    %386 = vector.shape_cast %385 : vector<1x1x32xf32> to vector<1x32xf32>
    %cst_150 = arith.constant dense<0.000000e+00> : vector<16xf32>
    %387 = vector.multi_reduction <add>, %382, %cst_150 [1] : vector<16x32xf32> to vector<16xf32>
    %388 = vector.shape_cast %387 : vector<16xf32> to vector<16x1xf32>
    %cst_151 = arith.constant 3.200000e+01 : f32
    %389 = vector.broadcast %cst_151 : f32 to vector<16x1xf32>
    %390 = arith.divf %388, %389 : vector<16x1xf32>
    %391 = vector.broadcast %390 : vector<16x1xf32> to vector<16x32xf32>
    %392 = arith.subf %382, %391 : vector<16x32xf32>
    %393 = arith.mulf %392, %392 : vector<16x32xf32>
    %cst_152 = arith.constant dense<0.000000e+00> : vector<16xf32>
    %394 = vector.multi_reduction <add>, %393, %cst_152 [1] : vector<16x32xf32> to vector<16xf32>
    %395 = vector.shape_cast %394 : vector<16xf32> to vector<16x1xf32>
    %cst_153 = arith.constant 3.200000e+01 : f32
    %396 = vector.broadcast %cst_153 : f32 to vector<16x1xf32>
    %397 = arith.divf %395, %396 : vector<16x1xf32>
    %398 = vector.broadcast %390 : vector<16x1xf32> to vector<16x32xf32>
    %399 = arith.subf %382, %398 : vector<16x32xf32>
    %cst_154 = arith.constant 9.99999996E-13 : f32
    %400 = vector.broadcast %cst_154 : f32 to vector<16x1xf32>
    %401 = arith.addf %397, %400 : vector<16x1xf32>
    %402 = math.rsqrt %401 : vector<16x1xf32>
    %403 = vector.broadcast %402 : vector<16x1xf32> to vector<16x32xf32>
    %404 = arith.mulf %399, %403 : vector<16x32xf32>
    %405 = vector.broadcast %384 : vector<1x32xf32> to vector<16x32xf32>
    %406 = arith.mulf %404, %405 : vector<16x32xf32>
    %407 = vector.broadcast %386 : vector<1x32xf32> to vector<16x32xf32>
    %408 = arith.addf %406, %407 : vector<16x32xf32>
    %c0_155 = arith.constant 0 : index
    %c0_156 = arith.constant 0 : index
    %409 = vector.load %arg17[%c0_155, %c0_156] : memref<32x128xbf16, #tpu.memory_space<vmem>>, vector<32x128xbf16>
    %410 = arith.truncf %408 : vector<16x32xf32> to vector<16x32xbf16>
    %cst_157 = arith.constant dense<0.000000e+00> : vector<16x128xf32>
    %411 = tpu.matmul %410, %409, %cst_157 {dimension_numbers = #tpu.dot_dimension_numbers<[1], [0], [0], [1], [0, 0, 1, 1], [], []>} : vector<16x32xbf16>, vector<32x128xbf16>, vector<16x128xf32> -> vector<16x128xf32>
    %c0_158 = arith.constant 0 : index
    %c0_159 = arith.constant 0 : index
    %412 = vector.load %arg18[%c0_158, %c0_159] : memref<1x128xf32, #tpu.memory_space<vmem>>, vector<1x128xf32>
    %413 = vector.broadcast %412 : vector<1x128xf32> to vector<16x128xf32>
    %414 = arith.addf %411, %413 : vector<16x128xf32>
    %cst_160 = arith.constant 0.000000e+00 : f32
    %415 = vector.broadcast %cst_160 : f32 to vector<16x128xf32>
    %416 = arith.maximumf %414, %415 : vector<16x128xf32>
    %417 = arith.truncf %416 : vector<16x128xf32> to vector<16x128xbf16>
    %c0_161 = arith.constant 0 : index
    %c0_162 = arith.constant 0 : index
    %418 = vector.load %arg19[%c0_161, %c0_162] : memref<16x128xbf16, #tpu.memory_space<vmem>>, vector<16x128xbf16>
    tpu.vector_store %arg19[%c0_161, %c0_162], %417 {strides = array<i32>} : memref<16x128xbf16, #tpu.memory_space<vmem>>, vector<16x128xbf16>,
    return
  }
  func.func @transform_0(%arg0: i32) -> (i32, i32) {
    %c0_i32 = arith.constant 0 : i32
    %c0_i32_0 = arith.constant 0 : i32
    return %arg0, %c0_i32 : i32, i32
  }
  func.func @transform_1(%arg0: i32) -> (i32, i32, i32) {
    %c0_i32 = arith.constant 0 : i32
    %c0_i32_0 = arith.constant 0 : i32
    %c0_i32_1 = arith.constant 0 : i32
    return %arg0, %c0_i32, %c0_i32_0 : i32, i32, i32
  }
  func.func @transform_2(%arg0: i32) -> (i32, i32) {
    %c0_i32 = arith.constant 0 : i32
    %c0_i32_0 = arith.constant 0 : i32
    %c0_i32_1 = arith.constant 0 : i32
    return %c0_i32, %c0_i32_0 : i32, i32
  }
  func.func @transform_3(%arg0: i32) -> (i32, i32) {
    %c0_i32 = arith.constant 0 : i32
    %c0_i32_0 = arith.constant 0 : i32
    %c0_i32_1 = arith.constant 0 : i32
    return %c0_i32, %c0_i32_0 : i32, i32
  }
  func.func @transform_4(%arg0: i32) -> (i32, i32, i32) {
    %c0_i32 = arith.constant 0 : i32
    %c0_i32_0 = arith.constant 0 : i32
    %c0_i32_1 = arith.constant 0 : i32
    %c0_i32_2 = arith.constant 0 : i32
    return %c0_i32, %c0_i32_0, %c0_i32_1 : i32, i32, i32
  }
  func.func @transform_5(%arg0: i32) -> (i32, i32, i32) {
    %c0_i32 = arith.constant 0 : i32
    %c0_i32_0 = arith.constant 0 : i32
    %c0_i32_1 = arith.constant 0 : i32
    %c0_i32_2 = arith.constant 0 : i32
    return %c0_i32, %c0_i32_0, %c0_i32_1 : i32, i32, i32
  }
  func.func @transform_6(%arg0: i32) -> (i32, i32, i32) {
    %c0_i32 = arith.constant 0 : i32
    %c0_i32_0 = arith.constant 0 : i32
    %c0_i32_1 = arith.constant 0 : i32
    %c0_i32_2 = arith.constant 0 : i32
    return %c0_i32, %c0_i32_0, %c0_i32_1 : i32, i32, i32
  }
  func.func @transform_7(%arg0: i32) -> (i32, i32, i32) {
    %c0_i32 = arith.constant 0 : i32
    %c0_i32_0 = arith.constant 0 : i32
    %c0_i32_1 = arith.constant 0 : i32
    %c0_i32_2 = arith.constant 0 : i32
    return %c0_i32, %c0_i32_0, %c0_i32_1 : i32, i32, i32
  }
  func.func @transform_8(%arg0: i32) -> (i32, i32, i32) {
    %c0_i32 = arith.constant 0 : i32
    %c0_i32_0 = arith.constant 0 : i32
    %c0_i32_1 = arith.constant 0 : i32
    %c0_i32_2 = arith.constant 0 : i32
    return %c0_i32, %c0_i32_0, %c0_i32_1 : i32, i32, i32
  }
  func.func @transform_9(%arg0: i32) -> (i32, i32, i32) {
    %c0_i32 = arith.constant 0 : i32
    %c0_i32_0 = arith.constant 0 : i32
    %c0_i32_1 = arith.constant 0 : i32
    %c0_i32_2 = arith.constant 0 : i32
    return %c0_i32, %c0_i32_0, %c0_i32_1 : i32, i32, i32
  }
  func.func @transform_10(%arg0: i32) -> (i32, i32, i32) {
    %c0_i32 = arith.constant 0 : i32
    %c0_i32_0 = arith.constant 0 : i32
    %c0_i32_1 = arith.constant 0 : i32
    %c0_i32_2 = arith.constant 0 : i32
    return %c0_i32, %c0_i32_0, %c0_i32_1 : i32, i32, i32
  }
  func.func @transform_11(%arg0: i32) -> (i32, i32, i32) {
    %c0_i32 = arith.constant 0 : i32
    %c0_i32_0 = arith.constant 0 : i32
    %c0_i32_1 = arith.constant 0 : i32
    %c0_i32_2 = arith.constant 0 : i32
    return %c0_i32, %c0_i32_0, %c0_i32_1 : i32, i32, i32
  }
  func.func @transform_12(%arg0: i32) -> (i32, i32, i32) {
    %c0_i32 = arith.constant 0 : i32
    %c0_i32_0 = arith.constant 0 : i32
    %c0_i32_1 = arith.constant 0 : i32
    %c0_i32_2 = arith.constant 0 : i32
    return %c0_i32, %c0_i32_0, %c0_i32_1 : i32, i32, i32
  }
  func.func @transform_13(%arg0: i32) -> (i32, i32, i32) {
    %c0_i32 = arith.constant 0 : i32
    %c0_i32_0 = arith.constant 0 : i32
    %c0_i32_1 = arith.constant 0 : i32
    %c0_i32_2 = arith.constant 0 : i32
    return %c0_i32, %c0_i32_0, %c0_i32_1 : i32, i32, i32
  }
  func.func @transform_14(%arg0: i32) -> (i32, i32, i32) {
    %c0_i32 = arith.constant 0 : i32
    %c0_i32_0 = arith.constant 0 : i32
    %c0_i32_1 = arith.constant 0 : i32
    %c0_i32_2 = arith.constant 0 : i32
    return %c0_i32, %c0_i32_0, %c0_i32_1 : i32, i32, i32
  }
  func.func @transform_15(%arg0: i32) -> (i32, i32, i32) {
    %c0_i32 = arith.constant 0 : i32
    %c0_i32_0 = arith.constant 0 : i32
    %c0_i32_1 = arith.constant 0 : i32
    %c0_i32_2 = arith.constant 0 : i32
    return %c0_i32, %c0_i32_0, %c0_i32_1 : i32, i32, i32
  }
  func.func @transform_16(%arg0: i32) -> (i32, i32) {
    %c0_i32 = arith.constant 0 : i32
    %c0_i32_0 = arith.constant 0 : i32
    %c0_i32_1 = arith.constant 0 : i32
    return %c0_i32, %c0_i32_0 : i32, i32
  }
  func.func @transform_17(%arg0: i32) -> (i32, i32) {
    %c0_i32 = arith.constant 0 : i32
    %c0_i32_0 = arith.constant 0 : i32
    %c0_i32_1 = arith.constant 0 : i32
    return %c0_i32, %c0_i32_0 : i32, i32
  }
  func.func @transform_18(%arg0: i32) -> (i32, i32) {
    %c0_i32 = arith.constant 0 : i32
    %c0_i32_0 = arith.constant 0 : i32
    return %arg0, %c0_i32 : i32, i32
  }
}

</mosaic_0001>

<bundles_post_ra>
// kernel: span_model_forward.1
= control target key start
LH: loop header
LB: loop body
LE: loop exit
PB: predicated region body
PF: predicated region fallthrough
CT: control target
= control target key end

     0   :  { %vm64_vm0 = vcmask 261120   ;;  %v2119_v4 = vmov 32.0   ;;  %s2121_s30 = smov 120   ;;  %s2123_s19 = smov 104   ;;  %vm176_vm8 = vcmask 64512   ;;  %vm466_vm9 = vcmask 1043456   ;;  %s2732_s0 = inlined_call_operand.vmem [shape: f32[16,32], index: 0, kind: input, shape index: {}]   ;;  %s2733_s2 = inlined_call_operand.vmem [shape: f32[1,32], index: 2, kind: input, shape index: {}]   ;;  %s2734_s3 = inlined_call_operand.vmem [shape: f32[1,32], index: 3, kind: input, shape index: {}]   ;;  %s2735_s5 = inlined_call_operand.vmem [shape: f32[2,1,96], index: 5, kind: input, shape index: {}]   ;;  %s2736_s4 = inlined_call_operand.vmem [shape: bf16[2,32,96], index: 4, kind: input, shape index: {}]   ;;  %s2737_s1 = inlined_call_operand.vmem [shape: f32[2,1,8], index: 1, kind: input, shape index: {}]   ;;  %s2738_s7 = inlined_call_operand.vmem [shape: f32[2,1,32], index: 7, kind: input, shape index: {}]   ;;  %s2739_s6 = inlined_call_operand.vmem [shape: bf16[2,32,32], index: 6, kind: input, shape index: {}]   ;;  %s2740_s8 = inlined_call_operand.vmem [shape: f32[2,1,32], index: 8, kind: input, shape index: {}]   ;;  %s2741_s9 = inlined_call_operand.vmem [shape: f32[2,1,32], index: 9, kind: input, shape index: {}]   ;;  %s2742_s11 = inlined_call_operand.vmem [shape: f32[2,1,64], index: 11, kind: input, shape index: {}]   ;;  %s2743_s10 = inlined_call_operand.vmem [shape: bf16[2,32,64], index: 10, kind: input, shape index: {}]   ;;  %s2744_s13 = inlined_call_operand.vmem [shape: f32[2,1,32], index: 13, kind: input, shape index: {}]   ;;  %s2745_s12 = inlined_call_operand.vmem [shape: bf16[2,64,32], index: 12, kind: input, shape index: {}]   ;;  %s2746_s14 = inlined_call_operand.vmem [shape: f32[2,1,32], index: 14, kind: input, shape index: {}]   ;;  %s2747_s15 = inlined_call_operand.vmem [shape: f32[2,1,32], index: 15, kind: input, shape index: {}]   ;;  %s2748_s17 = inlined_call_operand.vmem [shape: f32[1,128], index: 17, kind: input, shape index: {}]   ;;  %s2749_s16 = inlined_call_operand.vmem [shape: bf16[32,128], index: 16, kind: input, shape index: {}]   ;;  %s2750_s18 = inlined_call_operand.vmem [shape: bf16[16,128], index: 18, kind: output, shape index: {}]  }
   0x1   :  { %2765 = sst [smem:[#allocation2_spill]] %s2732_s0  ;;  %2025 = vrcp.f32 %v2119_v4  ;;  %v1933_v21 = vld [vmem:[%s2736_s4 + $0x8] sm:$0xff]  ;;  %v1932_v23 = vld [vmem:[%s2736_s4] sm:$0xff]  ;;  %s2122_s0 = smov 88   ;;  %vm559_vm10 = vcmask 130048   ;;  %vm561_vm11 = vcmask 195584  }
   0x2   :  { %2766 = sst [smem:[#allocation3_spill]] %s2733_s2  ;;  %164 = vmatpush.bf16.msra.mxu0 %v1933_v21  ;;  %v2006_v52 = vld [vmem:[%s2735_s5] ss:$0 sm:$0xff]  ;;  %s2124_s2 = smov 80  }
   0x3   :  { %2767 = sst [smem:[#allocation4_spill]] %s2734_s3  ;;  %s2763_s20 = smov 96  }
   0x4   :  { %s2768_s29 = sld [smem:[#allocation2_spill]]  ;;  %s2126_s21 = smov 72  }
   0x5   :  { %s2769_s23 = sld [smem:[#allocation3_spill]]  ;;  %s2757_s25 = smov 56  }
   0x6   :  { %165 = vmatpush.bf16.msra.mxu0 %v1932_v23  ;;  %s2770_s26 = sld [smem:[#allocation4_spill]]  ;;  %s2753_s27 = smov 64  }
   0x7   :  { %v2026_v5 = vpop.eup %2025  ;;  %s2752_s28 = smov 8   ;;  %s2756_s22 = smov 24  }
   0x8   :  { %v72_v6 = vmul.f32 32.0, %v2026_v5  ;;  %vm76_vm1 = vweird.f32 %v2026_v5  ;;  %s2755_s3 = smov 16  }
   0xa   :  { %v60_v0 = vld [vmem:[%s2768_s29] sm:$0xff]  ;;  %v61_v2 = vld [vmem:[%s2768_s29 + $0x8] sm:$0xff]  ;;  %v73_v7 = vsub.f32 1.0, %v72_v6  ;;  %s2120_s29 = smov 112  }
   0xb   :  { %v65_v1 = vsel %vm64_vm0, %v60_v0, 0.0  ;;  %v68_v3 = vsel %vm64_vm0, %v61_v2, 0.0  ;;  %v2004_v42 = vld [vmem:[%s2769_s23] ss:$0 sm:$0xff] }
   0xc   :  { %66 = vadd.xlane.f32.xlu0 %v65_v1  ;;  %v74_v8 = vmul.f32 %v2026_v5, %v73_v7  ;;  %v2005_v47 = vld [vmem:[%s2770_s26] ss:$0 sm:$0xff]  ;;  %s2759_s26 = smov 48  }
   0xe   :  { %v75_v9 = vadd.f32 %v2026_v5, %v74_v8 }
  0x10   :  { %v2237_v10 = vsel %vm76_vm1, %v2026_v5, %v75_v9 }
  0x14   :  { %69 = vadd.xlane.f32.xlu0 %v68_v3 }
  0x7f   :  { %v67_v11 = vpop.xlane.xlu0 %66 }
  0x80   :  { %v78_v12 = vmul.f32 %v2237_v10, %v67_v11 }
  0x82   :  { %v80_v13 = vsub.f32 %v60_v0, %v78_v12 }
  0x84   :  { %v82_v14 = vmul.f32 %v80_v13, %v80_v13 }
  0x86   :  { %v84_v15 = vsel %vm64_vm0, %v82_v14, 0.0 }
  0x87   :  { %85 = vadd.xlane.f32.xlu1 %v84_v15  ;;  %v70_v16 = vpop.xlane.xlu0 %69 }
  0x88   :  { %v79_v17 = vmul.f32 %v2237_v10, %v70_v16 }
  0x8a   :  { %v81_v18 = vsub.f32 %v61_v2, %v79_v17 }
  0x8c   :  { %v83_v19 = vmul.f32 %v81_v18, %v81_v18 }
  0x8e   :  { %v87_v20 = vsel %vm64_vm0, %v83_v19, 0.0 }
  0x8f   :  { %88 = vadd.xlane.f32.xlu1 %v87_v20 }
  0xfa   :  { %v86_v22 = vpop.xlane.xlu1 %85 }
  0xfb   :  { %v90_v24 = vmul.f32 %v86_v22, %v2237_v10 }
  0xfd   :  { %v92_v25 = vadd.f32 1e-12, %v90_v24 }
  0xff   :  { %2027 = vrsqrt.f32 %v92_v25  ;;  %vm100_vm3 = vweird.f32 %v92_v25 }
 0x102   :  { %v89_v26 = vpop.xlane.xlu1 %88 }
 0x103   :  { %v91_v27 = vmul.f32 %v89_v26, %v2237_v10 }
 0x105   :  { %v2028_v28 = vpop.eup %2027  ;;  %v93_v29 = vadd.f32 1e-12, %v91_v27 }
 0x106   :  { %v95_v30 = vmul.f32 %v2028_v28, %v92_v25  ;;  %vm101_vm2 = vweird.f32 %v2028_v28 }
 0x107   :  { %2029 = vrsqrt.f32 %v93_v29  ;;  %vm102_vm4 = vmor %vm100_vm3, %vm101_vm2  ;;  %vm110_vm6 = vweird.f32 %v93_v29  ;;  %vm851_vm3 = vcmask 523264  }
 0x108   :  { %v96_v31 = vmul.f32 %v2028_v28, %v95_v30 }
 0x10a   :  { %v97_v32 = vmul.f32 0.5, %v96_v31 }
 0x10c   :  { %v98_v33 = vsub.f32 1.5, %v97_v32 }
 0x10d   :  { %v2030_v34 = vpop.eup %2029 }
 0x10e   :  { %v99_v35 = vmul.f32 %v2028_v28, %v98_v33  ;;  %v105_v36 = vmul.f32 %v2030_v34, %v93_v29  ;;  %vm111_vm5 = vweird.f32 %v2030_v34  ;;  %v2329_v29 = vld [vmem:[%s2737_s1 + $0x1] ss:$0 sm:$0xff] }
 0x10f   :  { %vm112_vm7 = vmor %vm110_vm6, %vm111_vm5 }
 0x110   :  { %v106_v37 = vmul.f32 %v2030_v34, %v105_v36  ;;  %v103_v38 = vsel %vm102_vm4, %v2028_v28, %v99_v35 }
 0x111   :  { %v114_v41 = vmul.f32 %v103_v38, %v80_v13 }
 0x112   :  { %v107_v39 = vmul.f32 0.5, %v106_v37 }
 0x113   :  { %v119_v46 = vmul.f32 %v2004_v42, %v114_v41 }
 0x114   :  { %v108_v40 = vsub.f32 1.5, %v107_v39 }
 0x115   :  { %v2257_v49 = vadd.f32 %v2005_v47, %v119_v46 }
 0x116   :  { %v109_v43 = vmul.f32 %v2030_v34, %v108_v40 }
 0x118   :  { %v113_v44 = vsel %vm112_vm7, %v2030_v34, %v109_v43 }
 0x119   :  { %v115_v45 = vmul.f32 %v113_v44, %v81_v18  ;;  %v2320_v18 = vld [vmem:[%s2737_s1] ss:$0 sm:$0xff]  ;;  %s2761_s1 = smov 40  }
 0x11b   :  { %v120_v48 = vmul.f32 %v2004_v42, %v115_v45 }
 0x11d   :  { %v2259_v50 = vadd.f32 %v2005_v47, %v120_v48 }
 0x11f   :  { %v138_v51 = vpack.c.bf16 %v2259_v50, %v2257_v49 }
 0x121   :  { %1783 = vmatmul.msk.bf16.vlgmr.msra.gmra.mxu0 %vm64_vm0, %v138_v51 }
 0x19e   :  { %v167_v53 = vpop.f32.mrf.mxu0 }
 0x19f   :  { %v168_v54 = vadd.f32 %v2006_v52, %v167_v53 }
 0x1a1   :  { %v2267_v55 = vpack.c.bf16 %v168_v54, %v168_v54 }
 0x1a3   :  { %219 = vrot.lane.b32.xlu1 %v2267_v55, %s2120_s29  ;;  %196 = vrot.lane.b32.xlu0 %v2267_v55, %s2121_s30 }
 0x1a4   :  { %198 = vrot.lane.b32.xlu2 %v2267_v55, %s2122_s0 }
 0x1a6   :  { %v169_v56 = vpop.f32.mrf.mxu0 }
 0x1a7   :  { %v170_v57 = vadd.f32 %v2006_v52, %v169_v56 }
 0x1a9   :  { %v2275_v58 = vpack.c.bf16 %v170_v57, %v170_v57 }
 0x1ab   :  { %311 = vrot.lane.b32.xlu1 %v2275_v58, %s2120_s29  ;;  %242 = vrot.lane.b32.xlu0 %v2267_v55, %s2123_s19 }
 0x1ac   :  { %221 = vrot.lane.b32.xlu2 %v2267_v55, %s2124_s2 }
 0x1b3   :  { %174 = vrot.lane.b32.xlu1 %v2267_v55, %s2763_s20  ;;  %336 = vrot.lane.b32.xlu0 %v2275_v58, %s2126_s21 }
 0x1b4   :  { %244 = vrot.lane.b32.xlu2 %v2267_v55, %s2126_s21 }
 0x1bb   :  { %267 = vrot.lane.b32.xlu0 %v2275_v58, %s2763_s20 }
 0x1bc   :  { %290 = vrot.lane.b32.xlu2 %v2275_v58, %s2122_s0 }
 0x1c4   :  { %313 = vrot.lane.b32.xlu2 %v2275_v58, %s2124_s2 }
 0x1cc   :  { %288 = vrot.lane.b32.xlu2 %v2275_v58, %s2121_s30 }
 0x1d4   :  { %334 = vrot.lane.b32.xlu2 %v2275_v58, %s2123_s19 }
 0x1fe   :  { %v199_v59 = vpop.permute.xlu2 %198 }
 0x1ff   :  { %v204_v60 = vsel %vm176_vm8, %v199_v59, 0 }
 0x200   :  { %213 = vmatpush.bf16.xpose.msra.mxu2 %v204_v60 }
 0x206   :  { %v222_v61 = vpop.permute.xlu2 %221 }
 0x207   :  { %v227_v62 = vsel %vm176_vm8, %v222_v61, 0 }
 0x208   :  { %236 = vmatpush.bf16.xpose.msra.mxu3 %v227_v62 }
 0x20e   :  { %v245_v63 = vpop.permute.xlu2 %244 }
 0x20f   :  { %v250_v0 = vsel %vm176_vm8, %v245_v63, 0 }
 0x210   :  { %259 = vmatpush.bf16.xpose.msrb.mxu0 %v250_v0 }
 0x215   :  { %v220_v1 = vpop.permute.xlu1 %219  ;;  %v197_v2 = vpop.permute.xlu0 %196 }
 0x216   :  { %v291_v3 = vpop.permute.xlu2 %290  ;;  %1785 = vmatmul.msk.bf16.vlgmr.msra.gmra.mxu2 %vm176_vm8, %v197_v2  ;;  %1786 = vmatmul.msk.bf16.vlgmr.msra.gmra.mxu3 %vm176_vm8, %v220_v1 }
 0x217   :  { %v296_v4 = vsel %vm176_vm8, %v291_v3, 0 }
 0x218   :  { %305 = vmatpush.bf16.xpose.msrb.mxu2 %v296_v4 }
 0x21d   :  { %v312_v5 = vpop.permute.xlu1 %311  ;;  %v243_v6 = vpop.permute.xlu0 %242 }
 0x21e   :  { %v314_v7 = vpop.permute.xlu2 %313  ;;  %1787 = vmatmul.msk.bf16.vlgmr.msrb.gmra.mxu0 %vm176_vm8, %v243_v6 }
 0x21f   :  { %v319_v8 = vsel %vm176_vm8, %v314_v7, 0 }
 0x220   :  { %328 = vmatpush.bf16.xpose.msrb.mxu3 %v319_v8 }
 0x225   :  { %v175_v9 = vpop.permute.xlu1 %174  ;;  %v337_v11 = vpop.permute.xlu0 %336 }
 0x226   :  { %v342_v12 = vsel %vm176_vm8, %v337_v11, 0  ;;  %v289_v13 = vpop.permute.xlu2 %288  ;;  %v181_v14 = vsel %vm176_vm8, %v175_v9, 0 }
 0x227   :  { %1789 = vmatmul.msk.bf16.vlgmr.msrb.gmra.mxu2 %vm176_vm8, %v289_v13  ;;  %1790 = vmatmul.msk.bf16.vlgmr.msrb.gmra.mxu3 %vm176_vm8, %v312_v5 }
 0x228   :  { %190 = vmatpush.bf16.xpose.msra.mxu1 %v181_v14  ;;  %351 = vmatpush.bf16.xpose.msra.mxu0 %v342_v12 }
 0x22d   :  { %v268_v15 = vpop.permute.xlu0 %267 }
 0x22e   :  { %v335_v16 = vpop.permute.xlu2 %334  ;;  %v273_v17 = vsel %vm176_vm8, %v268_v15, 0 }
 0x22f   :  { %1784 = vmatmul.msk.bf16.vlgmr.msra.gmra.mxu1 %vm176_vm8, %v2267_v55  ;;  %1791 = vmatmul.msk.bf16.vlgmr.msra.gmra.mxu0 %vm176_vm8, %v335_v16 }
 0x230   :  { %282 = vmatpush.bf16.xpose.msrb.mxu1 %v273_v17 }
 0x23f   :  { %1788 = vmatmul.msk.bf16.vlgmr.msrb.gmra.mxu1 %vm176_vm8, %v2275_v58 }
 0x299   :  { %v215_v19 = vpop.f32.mrf.mxu2  ;;  %v238_v20 = vpop.f32.mrf.mxu3 }
 0x29a   :  { %v359_v21 = vadd.f32 %v2320_v18, %v238_v20  ;;  %v358_v42 = vadd.f32 %v2320_v18, %v215_v19 }
 0x29b   :  { %v261_v22 = vpop.f32.mrf.mxu0 }
 0x29c   :  { %v360_v23 = vadd.f32 %v2320_v18, %v261_v22  ;;  %v371_v24 = vsel %vm176_vm8, %v359_v21, -inf  ;;  %v368_v45 = vsel %vm176_vm8, %v358_v42, -inf }
 0x29d   :  { %372 = vmax.xlane.f32.xlu1 %v371_v24 }
 0x29e   :  { %v374_v25 = vsel %vm176_vm8, %v360_v23, -inf }
 0x29f   :  { %375 = vmax.xlane.f32.xlu0 %v374_v25 }
 0x2a1   :  { %v217_v26 = vpop.f32.mrf.mxu2  ;;  %v240_v27 = vpop.f32.mrf.mxu3 }
 0x2a3   :  { %v263_v28 = vpop.f32.mrf.mxu0 }
 0x2aa   :  { %v307_v30 = vpop.f32.mrf.mxu2  ;;  %v330_v31 = vpop.f32.mrf.mxu3 }
 0x2ab   :  { %v2332_v32 = vadd.f32 %v2329_v29, %v330_v31  ;;  %v362_v46 = vadd.f32 %v2329_v29, %v307_v30 }
 0x2ac   :  { %v192_v33 = vpop.f32.mrf.mxu1  ;;  %v353_v34 = vpop.f32.mrf.mxu0 }
 0x2ad   :  { %v2335_v35 = vadd.f32 %v2320_v18, %v192_v33  ;;  %v2338_v36 = vadd.f32 %v2329_v29, %v353_v34  ;;  %v383_v37 = vsel %vm176_vm8, %v2332_v32, -inf  ;;  %v380_v51 = vsel %vm176_vm8, %v362_v46, -inf }
 0x2ae   :  { %384 = vmax.xlane.f32.xlu1 %v383_v37 }
 0x2af   :  { %v365_v38 = vsel %vm176_vm8, %v2335_v35, -inf  ;;  %v386_v39 = vsel %vm176_vm8, %v2338_v36, -inf }
 0x2b0   :  { %366 = vmax.xlane.f32.xlu2 %v365_v38  ;;  %387 = vmax.xlane.f32.xlu0 %v386_v39 }
 0x2b2   :  { %v309_v40 = vpop.f32.mrf.mxu2  ;;  %v332_v41 = vpop.f32.mrf.mxu3 }
 0x2b4   :  { %v194_v43 = vpop.f32.mrf.mxu1  ;;  %v355_v44 = vpop.f32.mrf.mxu0 }
 0x2b8   :  { %369 = vmax.xlane.f32.xlu2 %v368_v45 }
 0x2bc   :  { %v284_v47 = vpop.f32.mrf.mxu1 }
 0x2bd   :  { %v361_v48 = vadd.f32 %v2329_v29, %v284_v47 }
 0x2bf   :  { %v377_v52 = vsel %vm176_vm8, %v361_v48, -inf }
 0x2c0   :  { %381 = vmax.xlane.f32.xlu2 %v380_v51  ;;  %378 = vmax.xlane.f32.xlu0 %v377_v52 }
 0x2c4   :  { %v286_v53 = vpop.f32.mrf.mxu1 }
 0x2d4   :  { %525 = vrot.lane.b32.xlu0 %v2267_v55, %s2761_s1 }
 0x2dc   :  { %584 = vrot.lane.b32.xlu0 %v2275_v58, %s2757_s25 }
 0x2e4   :  { %605 = vrot.lane.b32.xlu0 %v2275_v58, %s2759_s26 }
 0x310   :  { %v373_v54 = vpop.xlane.xlu1 %372 }
 0x311   :  { %v391_v56 = vsub.f32 %v359_v21, %v373_v54 }
 0x312   :  { %v376_v57 = vpop.xlane.xlu0 %375 }
 0x313   :  { %v401_v59 = vmul.f32 1.442695, %v391_v56  ;;  %v392_v60 = vsub.f32 %v360_v23, %v376_v57 }
 0x315   :  { %2031 = vpow2.f32 %v401_v59  ;;  %v403_v61 = vmul.f32 1.442695, %v392_v60 }
 0x317   :  { %2033 = vpow2.f32 %v403_v61 }
 0x31b   :  { %v2358_v62 = vpop.eup %2031 }
 0x31c   :  { %v419_v63 = vsel %vm176_vm8, %v2358_v62, 0.0 }
 0x31d   :  { %v2362_v0 = vpop.eup %2033  ;;  %420 = vadd.xlane.f32.xlu0 %v419_v63 }
 0x31e   :  { %v422_v1 = vsel %vm176_vm8, %v2362_v0, 0.0 }
 0x31f   :  { %423 = vadd.xlane.f32.xlu2 %v422_v1 }
 0x321   :  { %v385_v26 = vpop.xlane.xlu1 %384 }
 0x322   :  { %v395_v28 = vsub.f32 %v2332_v32, %v385_v26 }
 0x323   :  { %v367_v2 = vpop.xlane.xlu2 %366  ;;  %v388_v9 = vpop.xlane.xlu0 %387 }
 0x324   :  { %v396_v19 = vsub.f32 %v2338_v36, %v388_v9  ;;  %v409_v30 = vmul.f32 1.442695, %v395_v28  ;;  %v389_v31 = vsub.f32 %v2335_v35, %v367_v2 }
 0x326   :  { %v411_v20 = vmul.f32 1.442695, %v396_v19  ;;  %v397_v33 = vmul.f32 1.442695, %v389_v31 }
 0x32b   :  { %v370_v3 = vpop.xlane.xlu2 %369 }
 0x32c   :  { %v390_v4 = vsub.f32 %v358_v42, %v370_v3 }
 0x32e   :  { %v399_v5 = vmul.f32 1.442695, %v390_v4 }
 0x330   :  { %2035 = vpow2.f32 %v399_v5 }
 0x333   :  { %v382_v6 = vpop.xlane.xlu2 %381  ;;  %v379_v13 = vpop.xlane.xlu0 %378 }
 0x334   :  { %v394_v7 = vsub.f32 %v362_v46, %v382_v6  ;;  %v393_v21 = vsub.f32 %v361_v48, %v379_v13 }
 0x336   :  { %v2366_v8 = vpop.eup %2035  ;;  %v407_v11 = vmul.f32 1.442695, %v394_v7  ;;  %v405_v22 = vmul.f32 1.442695, %v393_v21 }
 0x337   :  { %504 = vrot.lane.b32.xlu2 %v2267_v55, %s2759_s26  ;;  %v416_v12 = vsel %vm176_vm8, %v2366_v8, 0.0 }
 0x338   :  { %417 = vadd.xlane.f32.xlu1 %v416_v12  ;;  %2037 = vpow2.f32 %v407_v11 }
 0x339   :  { %2039 = vpow2.f32 %v411_v20 }
 0x33a   :  { %2041 = vpow2.f32 %v405_v22 }
 0x33b   :  { %2043 = vpow2.f32 %v409_v30 }
 0x33c   :  { %2045 = vpow2.f32 %v397_v33 }
 0x33e   :  { %v2372_v14 = vpop.eup %2037 }
 0x33f   :  { %v428_v15 = vsel %vm176_vm8, %v2372_v14, 0.0  ;;  %v2382_v23 = vpop.eup %2039 }
 0x340   :  { %429 = vadd.xlane.f32.xlu0 %v428_v15  ;;  %v434_v24 = vsel %vm176_vm8, %v2382_v23, 0.0  ;;  %v2386_v25 = vpop.eup %2041 }
 0x341   :  { %v425_v27 = vsel %vm176_vm8, %v2386_v25, 0.0  ;;  %v2044_v34 = vpop.eup %2043 }
 0x342   :  { %v431_v36 = vsel %vm176_vm8, %v2044_v34, 0.0  ;;  %v2393_v37 = vpop.eup %2045 }
 0x343   :  { %v413_v39 = vsel %vm176_vm8, %v2393_v37, 0.0 }
 0x346   :  { %v526_v16 = vpop.permute.xlu0 %525 }
 0x347   :  { %v531_v17 = vsel %vm466_vm9, %v526_v16, 0 }
 0x348   :  { %540 = vmatpush.bf16.msrb.mxu0 %v531_v17 }
 0x34e   :  { %v585_v38 = vpop.permute.xlu0 %584 }
 0x34f   :  { %v590_v57 = vsel %vm466_vm9, %v585_v38, 0 }
 0x351   :  { %483 = vrot.lane.b32.xlu1 %v2267_v55, %s2757_s25 }
 0x354   :  { %626 = vrot.lane.b32.xlu0 %v2275_v58, %s2761_s1  ;;  %s2778_s1 = smov 16  }
 0x356   :  { %v606_v32 = vpop.permute.xlu0 %605 }
 0x357   :  { %v611_v47 = vsel %vm466_vm9, %v606_v32, 0 }
 0x360   :  { %435 = vadd.xlane.f32.xlu2 %v434_v24 }
 0x368   :  { %426 = vadd.xlane.f32.xlu2 %v425_v27 }
 0x37b   :  { %432 = vadd.xlane.f32.xlu1 %v431_v36 }
 0x37e   :  { %414 = vadd.xlane.f32.xlu0 %v413_v39 }
 0x380   :  { %563 = vrot.lane.b32.xlu2 %v2275_v58, %s2753_s27 }
 0x390   :  { %v421_v35 = vpop.xlane.xlu0 %420 }
 0x391   :  { %2047 = vrcp.f32 %v421_v35 }
 0x392   :  { %v424_v40 = vpop.xlane.xlu2 %423 }
 0x393   :  { %2049 = vrcp.f32 %v424_v40 }
 0x394   :  { %461 = vrot.lane.b32.xlu1 %v2267_v55, %s2753_s27 }
 0x397   :  { %v2048_v41 = vpop.eup %2047 }
 0x398   :  { %v447_v43 = vmul.f32 %v2048_v41, %v2358_v62 }
 0x399   :  { %v2050_v42 = vpop.eup %2049 }
 0x39a   :  { %v448_v44 = vmul.f32 %v2050_v42, %v2362_v0  ;;  %v505_v45 = vpop.permute.xlu2 %504  ;;  %v455_v48 = vpack.c.bf16 %v447_v43, %v447_v43  ;;  %v1935_v43 = vld [vmem:[%s2739_s6 + $0x8] sm:$0xff] }
 0x39b   :  { %v510_v46 = vsel %vm466_vm9, %v505_v45, 0 }
 0x39c   :  { %v456_v58 = vpack.c.bf16 %v448_v44, %v448_v44  ;;  %519 = vmatpush.bf16.msra.mxu3 %v510_v46  ;;  %v1934_v44 = vld [vmem:[%s2739_s6] sm:$0xff] }
 0x39e   :  { %1795 = vmatmul.msk.bf16.vlgmr.msrb.gmra.mxu0 %vm176_vm8, %v456_v58 }
 0x39f   :  { %1794 = vmatmul.msk.bf16.vlgmr.msra.gmra.mxu3 %vm176_vm8, %v455_v48 }
 0x3a0   :  { %620 = vmatpush.bf16.msrb.mxu3 %v611_v47 }
 0x3ab   :  { %v418_v55 = vpop.xlane.xlu1 %417 }
 0x3ac   :  { %2051 = vrcp.f32 %v418_v55 }
 0x3b2   :  { %v2052_v51 = vpop.eup %2051 }
 0x3b3   :  { %v430_v52 = vpop.xlane.xlu0 %429  ;;  %v446_v53 = vmul.f32 %v2052_v51, %v2366_v8 }
 0x3b4   :  { %2053 = vrcp.f32 %v430_v52 }
 0x3b5   :  { %v454_v59 = vpack.c.bf16 %v446_v53, %v446_v53 }
 0x3ba   :  { %v2054_v62 = vpop.eup %2053 }
 0x3bb   :  { %v450_v63 = vmul.f32 %v2054_v62, %v2372_v14 }
 0x3bd   :  { %v458_v1 = vpack.c.bf16 %v450_v63, %v450_v63  ;;  %v2009_v63 = vld [vmem:[%s2738_s7] ss:$0 sm:$0xff] }
 0x3c3   :  { %v484_v54 = vpop.permute.xlu1 %483 }
 0x3c4   :  { %v489_v56 = vsel %vm466_vm9, %v484_v54, 0 }
 0x3c5   :  { %498 = vmatpush.bf16.msra.mxu2 %v489_v56 }
 0x3c6   :  { %v627_v60 = vpop.permute.xlu0 %626 }
 0x3c7   :  { %v632_v61 = vsel %vm466_vm9, %v627_v60, 0 }
 0x3c8   :  { %1793 = vmatmul.msk.bf16.vlgmr.msra.gmra.mxu2 %vm176_vm8, %v454_v59  ;;  %641 = vmatpush.bf16.msra.mxu0 %v632_v61 }
 0x3c9   :  { %599 = vmatpush.bf16.msrb.mxu2 %v590_v57 }
 0x3d3   :  { %v436_v0 = vpop.xlane.xlu2 %435 }
 0x3d4   :  { %2055 = vrcp.f32 %v436_v0 }
 0x3d8   :  { %1797 = vmatmul.msk.bf16.vlgmr.msrb.gmra.mxu2 %vm176_vm8, %v458_v1 }
 0x3da   :  { %v2056_v2 = vpop.eup %2055 }
 0x3db   :  { %v452_v3 = vmul.f32 %v2056_v2, %v2382_v23  ;;  %v427_v11 = vpop.xlane.xlu2 %426 }
 0x3dd   :  { %v460_v4 = vpack.c.bf16 %v452_v3, %v452_v3 }
 0x3df   :  { %1799 = vmatmul.msk.bf16.vlgmr.msra.gmra.mxu0 %vm176_vm8, %v460_v4 }
 0x3e3   :  { %v564_v13 = vpop.permute.xlu2 %563 }
 0x3e4   :  { %v569_v17 = vsel %vm466_vm9, %v564_v13, 0 }
 0x3ee   :  { %v433_v5 = vpop.xlane.xlu1 %432 }
 0x3ef   :  { %2057 = vrcp.f32 %v433_v5 }
 0x3f1   :  { %v415_v9 = vpop.xlane.xlu0 %414 }
 0x3f2   :  { %2059 = vrcp.f32 %v415_v9 }
 0x3f3   :  { %2061 = vrcp.f32 %v427_v11 }
 0x3f5   :  { %v2058_v6 = vpop.eup %2057 }
 0x3f6   :  { %v451_v7 = vmul.f32 %v2058_v6, %v2044_v34 }
 0x3f8   :  { %v459_v8 = vpack.c.bf16 %v451_v7, %v451_v7  ;;  %v2060_v12 = vpop.eup %2059 }
 0x3f9   :  { %v445_v14 = vmul.f32 %v2060_v12, %v2393_v37  ;;  %v2062_v20 = vpop.eup %2061 }
 0x3fa   :  { %1798 = vmatmul.msk.bf16.vlgmr.msrb.gmra.mxu3 %vm176_vm8, %v459_v8  ;;  %v449_v21 = vmul.f32 %v2062_v20, %v2386_v25 }
 0x3fb   :  { %v453_v19 = vpack.c.bf16 %v445_v14, %v445_v14 }
 0x3fc   :  { %v457_v22 = vpack.c.bf16 %v449_v21, %v449_v21 }
 0x406   :  { %v462_v15 = vpop.permute.xlu1 %461 }
 0x407   :  { %v468_v16 = vsel %vm466_vm9, %v462_v15, 0 }
 0x408   :  { %477 = vmatpush.bf16.msra.mxu1 %v468_v16 }
 0x40b   :  { %1792 = vmatmul.msk.bf16.vlgmr.msra.gmra.mxu1 %vm176_vm8, %v453_v19 }
 0x40c   :  { %578 = vmatpush.bf16.msrb.mxu1 %v569_v17 }
 0x410   :  { %692 = vmatpush.bf16.msra.mxu1 %v1935_v43  ;;  %v2011_v43 = vld [vmem:[%s2741_s9] ss:$0 sm:$0xff] }
 0x414   :  { %693 = vmatpush.bf16.msra.mxu1 %v1934_v44 }
 0x41b   :  { %1796 = vmatmul.msk.bf16.vlgmr.msrb.gmra.mxu1 %vm176_vm8, %v457_v22  ;;  %v542_v23 = vpop.f32.mrf.mxu0  ;;  %v1936_v22 = vld [vmem:[%s2743_s10] sm:$0xff] }
 0x422   :  { %v521_v24 = vpop.f32.mrf.mxu3 }
 0x423   :  { %v544_v26 = vpop.f32.mrf.mxu0 }
 0x42a   :  { %v523_v27 = vpop.f32.mrf.mxu3 }
 0x44b   :  { %v500_v28 = vpop.f32.mrf.mxu2 }
 0x453   :  { %v502_v30 = vpop.f32.mrf.mxu2 }
 0x45b   :  { %v601_v31 = vpop.f32.mrf.mxu2 }
 0x45c   :  { %v1974_v33 = vpack.i.bf16 %v601_v31, %v500_v28  ;;  %v643_v34 = vpop.f32.mrf.mxu0 }
 0x45d   :  { %v1984_v36 = vpack.i.bf16 %v643_v34, %v542_v23 }
 0x45e   :  { %1975 = vrot.lane.b32.xlu1 %v1974_v33, %s2752_s28 }
 0x45f   :  { %1985 = vrot.lane.b32.xlu2 %v1984_v36, %s2756_s22 }
 0x463   :  { %v603_v25 = vpop.f32.mrf.mxu2 }
 0x464   :  { %v645_v37 = vpop.f32.mrf.mxu0 }
 0x47d   :  { %v622_v38 = vpop.f32.mrf.mxu3 }
 0x47e   :  { %v1979_v39 = vpack.i.bf16 %v622_v38, %v521_v24 }
 0x480   :  { %1980 = vrot.lane.b32.xlu1 %v1979_v39, %s2755_s3 }
 0x485   :  { %v624_v32 = vpop.f32.mrf.mxu3 }
 0x488   :  { %v479_v35 = vpop.f32.mrf.mxu1 }
 0x490   :  { %v481_v40 = vpop.f32.mrf.mxu1 }
 0x498   :  { %v580_v41 = vpop.f32.mrf.mxu1 }
 0x4a0   :  { %v582_v42 = vpop.f32.mrf.mxu1 }
 0x4b9   :  { %v1986_v58 = vpop.permute.xlu2 %1985 }
 0x4ba   :  { %v1988_v52 = vunpack.i.h.bf16 %v1986_v58  ;;  %v1987_v53 = vunpack.i.l.bf16 %v1986_v58 }
 0x4d0   :  { %v1976_v45 = vpop.permute.xlu1 %1975 }
 0x4d1   :  { %v1978_v46 = vunpack.i.h.bf16 %v1976_v45  ;;  %v1977_v47 = vunpack.i.l.bf16 %v1976_v45 }
 0x4d3   :  { %v558_v54 = vsel %vm176_vm8, %v479_v35, %v1977_v47  ;;  %v659_v56 = vsel %vm176_vm8, %v580_v41, %v1978_v46  ;;  %v2010_v35 = vld [vmem:[%s2740_s8] ss:$0 sm:$0xff] }
 0x4f2   :  { %v1981_v48 = vpop.permute.xlu1 %1980 }
 0x4f3   :  { %v1983_v55 = vunpack.i.h.bf16 %v1981_v48  ;;  %v1982_v51 = vunpack.i.l.bf16 %v1981_v48 }
 0x4f5   :  { %v560_v57 = vsel %vm559_vm10, %v558_v54, %v1982_v51  ;;  %v660_v59 = vsel %vm559_vm10, %v659_v56, %v1983_v55  ;;  %v1941_v55 = vld [vmem:[%s2745_s12 + $0x18] sm:$0xff]  ;;  %v1940_v51 = vld [vmem:[%s2745_s12 + $0x10] sm:$0xff]  ;;  %v1938_v56 = vld [vmem:[%s2745_s12] sm:$0xff] }
 0x4f6   :  { %v562_v60 = vsel %vm561_vm11, %v560_v57, %v1987_v53  ;;  %v661_v61 = vsel %vm561_vm11, %v660_v59, %v1988_v52  ;;  %859 = vmatpush.bf16.msra.mxu3 %v1941_v55  ;;  %v1939_v52 = vld [vmem:[%s2745_s12 + $0x8] sm:$0xff]  ;;  %v2012_v53 = vld [vmem:[%s2742_s11] ss:$0 sm:$0xff] }
 0x4f7   :  { %v666_v62 = vpack.c.bf16 %v661_v61, %v562_v60 }
 0x4f9   :  { %1808 = vmatmul.msk.bf16.vlgmr.msra.gmra.mxu1 %vm64_vm0, %v666_v62 }
 0x4fa   :  { %860 = vmatpush.bf16.msra.mxu3 %v1940_v51 }
 0x4fe   :  { %861 = vmatpush.bf16.msra.mxu3 %v1939_v52 }
 0x502   :  { %862 = vmatpush.bf16.msra.mxu3 %v1938_v56 }
 0x576   :  { %v695_v0 = vpop.f32.mrf.mxu1 }
 0x577   :  { %v696_v1 = vadd.f32 %v2009_v63, %v695_v0 }
 0x579   :  { %v700_v2 = vadd.f32 %v696_v1, %v2257_v49 }
 0x57b   :  { %v704_v3 = vsel %vm64_vm0, %v700_v2, 0.0 }
 0x57c   :  { %705 = vadd.xlane.f32.xlu0 %v704_v3 }
 0x57e   :  { %v697_v4 = vpop.f32.mrf.mxu1 }
 0x57f   :  { %v698_v5 = vadd.f32 %v2009_v63, %v697_v4 }
 0x581   :  { %v701_v6 = vadd.f32 %v698_v5, %v2259_v50  ;;  %v1937_v50 = vld [vmem:[%s2743_s10 + $0x8] sm:$0xff] }
 0x582   :  { %788 = vmatpush.bf16.msra.mxu2 %v1937_v50 }
 0x583   :  { %v707_v7 = vsel %vm64_vm0, %v701_v6, 0.0 }
 0x584   :  { %708 = vadd.xlane.f32.xlu1 %v707_v7 }
 0x586   :  { %789 = vmatpush.bf16.msra.mxu2 %v1936_v22 }
 0x5ef   :  { %v706_v8 = vpop.xlane.xlu0 %705 }
 0x5f0   :  { %v710_v9 = vmul.f32 %v706_v8, %v2237_v10 }
 0x5f2   :  { %v712_v11 = vsub.f32 %v700_v2, %v710_v9 }
 0x5f4   :  { %v714_v12 = vmul.f32 %v712_v11, %v712_v11 }
 0x5f6   :  { %v716_v13 = vsel %vm64_vm0, %v714_v12, 0.0 }
 0x5f7   :  { %v709_v14 = vpop.xlane.xlu1 %708  ;;  %717 = vadd.xlane.f32.xlu2 %v716_v13 }
 0x5f8   :  { %v711_v49 = vmul.f32 %v709_v14, %v2237_v10 }
 0x5fa   :  { %v713_v15 = vsub.f32 %v701_v6, %v711_v49 }
 0x5fc   :  { %v715_v16 = vmul.f32 %v713_v15, %v713_v15 }
 0x5fe   :  { %v719_v17 = vsel %vm64_vm0, %v715_v16, 0.0  ;;  %v2013_v16 = vld [vmem:[%s2744_s13] ss:$0 sm:$0xff] }
 0x5ff   :  { %720 = vadd.xlane.f32.xlu0 %v719_v17 }
 0x66a   :  { %v718_v19 = vpop.xlane.xlu2 %717 }
 0x66b   :  { %v722_v20 = vmul.f32 %v718_v19, %v2237_v10 }
 0x66d   :  { %v724_v21 = vadd.f32 1e-12, %v722_v20 }
 0x66f   :  { %2063 = vrsqrt.f32 %v724_v21  ;;  %vm732_vm13 = vweird.f32 %v724_v21 }
 0x672   :  { %v721_v23 = vpop.xlane.xlu0 %720 }
 0x673   :  { %v723_v24 = vmul.f32 %v721_v23, %v2237_v10 }
 0x675   :  { %v2064_v26 = vpop.eup %2063  ;;  %v725_v27 = vadd.f32 1e-12, %v723_v24 }
 0x676   :  { %v727_v28 = vmul.f32 %v2064_v26, %v724_v21  ;;  %vm733_vm12 = vweird.f32 %v2064_v26 }
 0x677   :  { %2065 = vrsqrt.f32 %v725_v27  ;;  %vm734_vm14 = vmor %vm732_vm13, %vm733_vm12  ;;  %vm742_vm1 = vweird.f32 %v725_v27 }
 0x678   :  { %v728_v30 = vmul.f32 %v2064_v26, %v727_v28 }
 0x67a   :  { %v729_v31 = vmul.f32 0.5, %v728_v30 }
 0x67c   :  { %v730_v33 = vsub.f32 1.5, %v729_v31 }
 0x67d   :  { %v2066_v34 = vpop.eup %2065 }
 0x67e   :  { %v731_v36 = vmul.f32 %v2064_v26, %v730_v33  ;;  %v737_v25 = vmul.f32 %v2066_v34, %v725_v27  ;;  %vm743_vm15 = vweird.f32 %v2066_v34 }
 0x67f   :  { %vm744_vm2 = vmor %vm742_vm1, %vm743_vm15 }
 0x680   :  { %v738_v37 = vmul.f32 %v2066_v34, %v737_v25  ;;  %v735_v38 = vsel %vm734_vm14, %v2064_v26, %v731_v36 }
 0x681   :  { %v746_v40 = vmul.f32 %v735_v38, %v712_v11  ;;  %v1943_v38 = vld [vmem:[%s2736_s4 + $0x18] sm:$0xff] }
 0x682   :  { %v739_v39 = vmul.f32 0.5, %v738_v37  ;;  %959 = vmatpush.bf16.msrb.mxu0 %v1943_v38 }
 0x683   :  { %v751_v44 = vmul.f32 %v2010_v35, %v746_v40  ;;  %v1942_v40 = vld [vmem:[%s2736_s4 + $0x10] sm:$0xff] }
 0x684   :  { %v740_v32 = vsub.f32 1.5, %v739_v39 }
 0x685   :  { %v756_v47 = vadd.f32 %v2011_v43, %v751_v44 }
 0x686   :  { %v741_v41 = vmul.f32 %v2066_v34, %v740_v32  ;;  %960 = vmatpush.bf16.msrb.mxu0 %v1942_v40 }
 0x688   :  { %v745_v42 = vsel %vm744_vm2, %v2066_v34, %v741_v41 }
 0x689   :  { %v747_v45 = vmul.f32 %v745_v42, %v713_v15 }
 0x68b   :  { %v752_v46 = vmul.f32 %v2010_v35, %v747_v45 }
 0x68d   :  { %v757_v58 = vadd.f32 %v2011_v43, %v752_v46 }
 0x68f   :  { %v762_v48 = vpack.c.bf16 %v757_v58, %v756_v47 }
 0x691   :  { %1817 = vmatmul.msk.bf16.vlgmr.msra.gmra.mxu2 %vm64_vm0, %v762_v48 }
 0x714   :  { %v791_v54 = vpop.f32.mrf.mxu2 }
 0x715   :  { %v792_v57 = vadd.f32 %v2012_v53, %v791_v54 }
 0x717   :  { %v796_v59 = vmul.f32 %v792_v57, %v792_v57 }
 0x719   :  { %v798_v60 = vmul.f32 %v796_v59, %v792_v57 }
 0x71b   :  { %v800_v61 = vmul.f32 0.044715, %v798_v60 }
 0x71c   :  { %v793_v62 = vpop.f32.mrf.mxu2 }
 0x71d   :  { %v802_v63 = vadd.f32 %v800_v61, %v792_v57  ;;  %v794_v0 = vadd.f32 %v2012_v53, %v793_v62  ;;  %v2015_v62 = vld [vmem:[%s2747_s15] ss:$0 sm:$0xff] }
 0x71f   :  { %v804_v1 = vmul.f32 0.7978846, %v802_v63  ;;  %v797_v2 = vmul.f32 %v794_v0, %v794_v0 }
 0x721   :  { %v799_v3 = vmul.f32 %v797_v2, %v794_v0  ;;  %2067 = vtanh.f32 %v804_v1 }
 0x723   :  { %v801_v4 = vmul.f32 0.044715, %v799_v3 }
 0x725   :  { %v803_v5 = vadd.f32 %v801_v4, %v794_v0 }
 0x727   :  { %v805_v6 = vmul.f32 0.7978846, %v803_v5  ;;  %v2068_v7 = vpop.eup %2067  ;;  %v2016_v5 = vld [vmem:[%s2735_s5 + $0x1] ss:$0 sm:$0xff]  ;;  %s2771_s5 = smov 96  }
 0x728   :  { %v808_v8 = vadd.f32 1.0, %v2068_v7 }
 0x729   :  { %2069 = vtanh.f32 %v805_v6 }
 0x72a   :  { %v810_v11 = vmul.f32 0.5, %v808_v8 }
 0x72c   :  { %v812_v14 = vmul.f32 %v810_v11, %v792_v57  ;;  %v2014_v57 = vld [vmem:[%s2746_s14] ss:$0 sm:$0xff] }
 0x72f   :  { %v2070_v9 = vpop.eup %2069 }
 0x730   :  { %v809_v12 = vadd.f32 1.0, %v2070_v9 }
 0x732   :  { %v811_v13 = vmul.f32 0.5, %v809_v12 }
 0x734   :  { %v813_v49 = vmul.f32 %v811_v13, %v794_v0 }
 0x736   :  { %v822_v15 = vpack.c.bf16 %v813_v49, %v812_v14 }
 0x738   :  { %1834 = vmatmul.msk.bf16.vlgmr.msra.gmra.mxu3 %vm851_vm3, %v822_v15 }
 0x7bb   :  { %v864_v17 = vpop.f32.mrf.mxu3 }
 0x7bc   :  { %v865_v50 = vadd.f32 %v2013_v16, %v864_v17 }
 0x7be   :  { %v869_v19 = vadd.f32 %v865_v50, %v756_v47 }
 0x7c0   :  { %v873_v20 = vsel %vm64_vm0, %v869_v19, 0.0 }
 0x7c1   :  { %874 = vadd.xlane.f32.xlu0 %v873_v20 }
 0x7c3   :  { %v866_v21 = vpop.f32.mrf.mxu3 }
 0x7c4   :  { %v867_v22 = vadd.f32 %v2013_v16, %v866_v21 }
 0x7c6   :  { %v870_v23 = vadd.f32 %v867_v22, %v757_v58 }
 0x7c8   :  { %v876_v24 = vsel %vm64_vm0, %v870_v23, 0.0 }
 0x7c9   :  { %877 = vadd.xlane.f32.xlu0 %v876_v24 }
 0x834   :  { %v875_v26 = vpop.xlane.xlu0 %874 }
 0x835   :  { %v879_v27 = vmul.f32 %v875_v26, %v2237_v10 }
 0x837   :  { %v881_v28 = vsub.f32 %v869_v19, %v879_v27 }
 0x839   :  { %v883_v30 = vmul.f32 %v881_v28, %v881_v28 }
 0x83b   :  { %v885_v31 = vsel %vm64_vm0, %v883_v30, 0.0 }
 0x83c   :  { %886 = vadd.xlane.f32.xlu0 %v885_v31  ;;  %v878_v33 = vpop.xlane.xlu0 %877 }
 0x83d   :  { %v880_v34 = vmul.f32 %v878_v33, %v2237_v10 }
 0x83f   :  { %v882_v36 = vsub.f32 %v870_v23, %v880_v34 }
 0x841   :  { %v884_v25 = vmul.f32 %v882_v36, %v882_v36 }
 0x843   :  { %v888_v37 = vsel %vm64_vm0, %v884_v25, 0.0 }
 0x844   :  { %889 = vadd.xlane.f32.xlu0 %v888_v37 }
 0x8af   :  { %v887_v39 = vpop.xlane.xlu0 %886 }
 0x8b0   :  { %v891_v32 = vmul.f32 %v887_v39, %v2237_v10 }
 0x8b2   :  { %v893_v35 = vadd.f32 1e-12, %v891_v32 }
 0x8b4   :  { %2071 = vrsqrt.f32 %v893_v35  ;;  %vm901_vm5 = vweird.f32 %v893_v35 }
 0x8b7   :  { %v890_v41 = vpop.xlane.xlu0 %889 }
 0x8b8   :  { %v892_v42 = vmul.f32 %v890_v41, %v2237_v10 }
 0x8ba   :  { %v2072_v43 = vpop.eup %2071  ;;  %v894_v44 = vadd.f32 1e-12, %v892_v42 }
 0x8bb   :  { %v896_v45 = vmul.f32 %v2072_v43, %v893_v35  ;;  %vm902_vm4 = vweird.f32 %v2072_v43 }
 0x8bc   :  { %2073 = vrsqrt.f32 %v894_v44  ;;  %vm903_vm6 = vmor %vm901_vm5, %vm902_vm4  ;;  %vm911_vm12 = vweird.f32 %v894_v44 }
 0x8bd   :  { %v897_v46 = vmul.f32 %v2072_v43, %v896_v45 }
 0x8bf   :  { %v898_v47 = vmul.f32 0.5, %v897_v46 }
 0x8c1   :  { %v899_v58 = vsub.f32 1.5, %v898_v47 }
 0x8c2   :  { %v2074_v48 = vpop.eup %2073 }
 0x8c3   :  { %v900_v55 = vmul.f32 %v2072_v43, %v899_v58  ;;  %v906_v51 = vmul.f32 %v2074_v48, %v894_v44  ;;  %vm912_vm7 = vweird.f32 %v2074_v48 }
 0x8c4   :  { %vm913_vm13 = vmor %vm911_vm12, %vm912_vm7 }
 0x8c5   :  { %v907_v52 = vmul.f32 %v2074_v48, %v906_v51  ;;  %v904_v53 = vsel %vm903_vm6, %v2072_v43, %v900_v55 }
 0x8c6   :  { %v915_v59 = vmul.f32 %v904_v53, %v881_v28 }
 0x8c7   :  { %v908_v54 = vmul.f32 0.5, %v907_v52 }
 0x8c8   :  { %v920_v63 = vmul.f32 %v2014_v57, %v915_v59 }
 0x8c9   :  { %v909_v56 = vsub.f32 1.5, %v908_v54 }
 0x8ca   :  { %v2504_v2 = vadd.f32 %v2015_v62, %v920_v63 }
 0x8cb   :  { %v910_v60 = vmul.f32 %v2074_v48, %v909_v56 }
 0x8cd   :  { %v914_v61 = vsel %vm913_vm13, %v2074_v48, %v910_v60 }
 0x8ce   :  { %v916_v0 = vmul.f32 %v914_v61, %v882_v36 }
 0x8d0   :  { %v921_v1 = vmul.f32 %v2014_v57, %v916_v0 }
 0x8d2   :  { %v2506_v3 = vadd.f32 %v2015_v62, %v921_v1 }
 0x8d4   :  { %v932_v4 = vpack.c.bf16 %v2506_v3, %v2504_v2 }
 0x8d6   :  { %1848 = vmatmul.msk.bf16.vlgmr.msrb.gmra.mxu0 %vm64_vm0, %v932_v4 }
 0x953   :  { %v962_v6 = vpop.f32.mrf.mxu0 }
 0x954   :  { %v963_v7 = vadd.f32 %v2016_v5, %v962_v6 }
 0x956   :  { %v2514_v8 = vpack.c.bf16 %v963_v7, %v963_v7 }
 0x958   :  { %990 = vrot.lane.b32.xlu0 %v2514_v8, %s2121_s30  ;;  %1015 = vrot.lane.b32.xlu2 %v2514_v8, %s2124_s2 }
 0x959   :  { %992 = vrot.lane.b32.xlu1 %v2514_v8, %s2122_s0 }
 0x95b   :  { %v964_v9 = vpop.f32.mrf.mxu0 }
 0x95c   :  { %v965_v11 = vadd.f32 %v2016_v5, %v964_v9 }
 0x95e   :  { %v2522_v12 = vpack.c.bf16 %v965_v11, %v965_v11 }
 0x960   :  { %1013 = vrot.lane.b32.xlu0 %v2514_v8, %s2120_s29  ;;  %1084 = vrot.lane.b32.xlu2 %v2522_v12, %s2122_s0  ;;  %s2774_s0 = smov 56  }
 0x961   :  { %1038 = vrot.lane.b32.xlu1 %v2514_v8, %s2126_s21 }
 0x968   :  { %1107 = vrot.lane.b32.xlu0 %v2522_v12, %s2124_s2  ;;  %1082 = vrot.lane.b32.xlu2 %v2522_v12, %s2121_s30  ;;  %s2773_s30 = smov 48   ;;  %s2776_s2 = smov 8  }
 0x969   :  { %1036 = vrot.lane.b32.xlu1 %v2514_v8, %s2123_s19 }
 0x970   :  { %1105 = vrot.lane.b32.xlu0 %v2522_v12, %s2120_s29  ;;  %1128 = vrot.lane.b32.xlu2 %v2522_v12, %s2123_s19  ;;  %s2772_s29 = smov 40   ;;  %s2775_s19 = smov 64  }
 0x971   :  { %1130 = vrot.lane.b32.xlu1 %v2522_v12, %s2126_s21  ;;  %s2777_s21 = smov 24  }
 0x978   :  { %969 = vrot.lane.b32.xlu0 %v2514_v8, %s2771_s5 }
 0x979   :  { %1061 = vrot.lane.b32.xlu1 %v2522_v12, %s2771_s5 }
 0x9b2   :  { %v1016_v13 = vpop.permute.xlu2 %1015 }
 0x9b3   :  { %v1021_v14 = vsel %vm176_vm8, %v1016_v13, 0 }
 0x9b4   :  { %1030 = vmatpush.bf16.xpose.msrb.mxu3 %v1021_v14 }
 0x9ba   :  { %v1085_v49 = vpop.permute.xlu2 %1084 }
 0x9bb   :  { %v1090_v50 = vsel %vm176_vm8, %v1085_v49, 0 }
 0x9c2   :  { %v1083_v26 = vpop.permute.xlu2 %1082 }
 0x9ca   :  { %v991_v15 = vpop.permute.xlu0 %990  ;;  %v1129_v33 = vpop.permute.xlu2 %1128 }
 0x9cb   :  { %v993_v16 = vpop.permute.xlu1 %992 }
 0x9cc   :  { %v998_v17 = vsel %vm176_vm8, %v993_v16, 0 }
 0x9cd   :  { %1007 = vmatpush.bf16.xpose.msrb.mxu2 %v998_v17 }
 0x9d2   :  { %v1014_v19 = vpop.permute.xlu0 %1013 }
 0x9d3   :  { %v1039_v20 = vpop.permute.xlu1 %1038  ;;  %1851 = vmatmul.msk.bf16.vlgmr.msrb.gmra.mxu3 %vm176_vm8, %v1014_v19 }
 0x9d4   :  { %v1044_v21 = vsel %vm176_vm8, %v1039_v20, 0  ;;  %1850 = vmatmul.msk.bf16.vlgmr.msrb.gmra.mxu2 %vm176_vm8, %v991_v15 }
 0x9d5   :  { %1099 = vmatpush.bf16.xpose.msra.mxu2 %v1090_v50  ;;  %1053 = vmatpush.bf16.xpose.msra.mxu0 %v1044_v21 }
 0x9da   :  { %v1108_v22 = vpop.permute.xlu0 %1107 }
 0x9db   :  { %v1113_v23 = vsel %vm176_vm8, %v1108_v22, 0  ;;  %v1037_v24 = vpop.permute.xlu1 %1036 }
 0x9dc   :  { %1852 = vmatmul.msk.bf16.vlgmr.msra.gmra.mxu0 %vm176_vm8, %v1037_v24  ;;  %1122 = vmatpush.bf16.xpose.msra.mxu3 %v1113_v23 }
 0x9e2   :  { %v1106_v27 = vpop.permute.xlu0 %1105 }
 0x9e3   :  { %v1131_v28 = vpop.permute.xlu1 %1130  ;;  %1855 = vmatmul.msk.bf16.vlgmr.msra.gmra.mxu3 %vm176_vm8, %v1106_v27 }
 0x9e4   :  { %v1136_v30 = vsel %vm176_vm8, %v1131_v28, 0  ;;  %1854 = vmatmul.msk.bf16.vlgmr.msra.gmra.mxu2 %vm176_vm8, %v1083_v26 }
 0x9e5   :  { %1145 = vmatpush.bf16.xpose.msrb.mxu0 %v1136_v30 }
 0x9ea   :  { %v970_v31 = vpop.permute.xlu0 %969 }
 0x9eb   :  { %v975_v34 = vsel %vm176_vm8, %v970_v31, 0  ;;  %v1062_v36 = vpop.permute.xlu1 %1061 }
 0x9ec   :  { %v1067_v25 = vsel %vm176_vm8, %v1062_v36, 0  ;;  %1856 = vmatmul.msk.bf16.vlgmr.msrb.gmra.mxu0 %vm176_vm8, %v1129_v33  ;;  %984 = vmatpush.bf16.xpose.msrb.mxu1 %v975_v34 }
 0x9f3   :  { %1849 = vmatmul.msk.bf16.vlgmr.msrb.gmra.mxu1 %vm176_vm8, %v2514_v8 }
 0x9f4   :  { %1076 = vmatpush.bf16.xpose.msra.mxu1 %v1067_v25 }
 0xa03   :  { %1853 = vmatmul.msk.bf16.vlgmr.msra.gmra.mxu1 %vm176_vm8, %v2522_v12 }
 0xa56   :  { %v1032_v37 = vpop.f32.mrf.mxu3 }
 0xa57   :  { %v1009_v38 = vpop.f32.mrf.mxu2  ;;  %v1153_v39 = vadd.f32 %v2320_v18, %v1032_v37 }
 0xa58   :  { %v1152_v60 = vadd.f32 %v2320_v18, %v1009_v38 }
 0xa59   :  { %v1055_v32 = vpop.f32.mrf.mxu0  ;;  %v1165_v35 = vsel %vm176_vm8, %v1153_v39, -inf }
 0xa5a   :  { %v1154_v40 = vadd.f32 %v2320_v18, %v1055_v32  ;;  %1166 = vmax.xlane.f32.xlu0 %v1165_v35  ;;  %v1162_v62 = vsel %vm176_vm8, %v1152_v60, -inf }
 0xa5c   :  { %v1168_v41 = vsel %vm176_vm8, %v1154_v40, -inf }
 0xa5d   :  { %1169 = vmax.xlane.f32.xlu1 %v1168_v41 }
 0xa5e   :  { %v1034_v42 = vpop.f32.mrf.mxu3 }
 0xa5f   :  { %v1011_v43 = vpop.f32.mrf.mxu2 }
 0xa61   :  { %v1057_v44 = vpop.f32.mrf.mxu0 }
 0xa66   :  { %v1124_v45 = vpop.f32.mrf.mxu3 }
 0xa67   :  { %v1101_v46 = vpop.f32.mrf.mxu2  ;;  %v2569_v47 = vadd.f32 %v2329_v29, %v1124_v45 }
 0xa68   :  { %v1156_v63 = vadd.f32 %v2329_v29, %v1101_v46 }
 0xa69   :  { %v1147_v58 = vpop.f32.mrf.mxu0  ;;  %v1177_v48 = vsel %vm176_vm8, %v2569_v47, -inf }
 0xa6a   :  { %v1158_v55 = vadd.f32 %v2329_v29, %v1147_v58  ;;  %1178 = vmax.xlane.f32.xlu0 %v1177_v48  ;;  %v1174_v4 = vsel %vm176_vm8, %v1156_v63, -inf }
 0xa6c   :  { %v1180_v51 = vsel %vm176_vm8, %v1158_v55, -inf }
 0xa6d   :  { %1181 = vmax.xlane.f32.xlu1 %v1180_v51 }
 0xa6e   :  { %v1126_v52 = vpop.f32.mrf.mxu3 }
 0xa6f   :  { %v1103_v53 = vpop.f32.mrf.mxu2 }
 0xa70   :  { %v986_v54 = vpop.f32.mrf.mxu1 }
 0xa71   :  { %v2576_v56 = vadd.f32 %v2320_v18, %v986_v54  ;;  %v1149_v57 = vpop.f32.mrf.mxu0 }
 0xa73   :  { %v1159_v59 = vsel %vm176_vm8, %v2576_v56, -inf }
 0xa74   :  { %1160 = vmax.xlane.f32.xlu2 %v1159_v59 }
 0xa78   :  { %v988_v61 = vpop.f32.mrf.mxu1 }
 0xa7c   :  { %1163 = vmax.xlane.f32.xlu2 %v1162_v62 }
 0xa80   :  { %v1078_v0 = vpop.f32.mrf.mxu1 }
 0xa81   :  { %v1155_v1 = vadd.f32 %v2329_v29, %v1078_v0 }
 0xa83   :  { %v1171_v5 = vsel %vm176_vm8, %v1155_v1, -inf }
 0xa84   :  { %1175 = vmax.xlane.f32.xlu2 %v1174_v4  ;;  %1172 = vmax.xlane.f32.xlu1 %v1171_v5 }
 0xa88   :  { %v1080_v6 = vpop.f32.mrf.mxu1 }
 0xa9d   :  { %1318 = vrot.lane.b32.xlu1 %v2514_v8, %s2772_s29 }
 0xacd   :  { %v1167_v18 = vpop.xlane.xlu0 %1166 }
 0xace   :  { %v1185_v7 = vsub.f32 %v1153_v39, %v1167_v18 }
 0xad0   :  { %v1195_v9 = vmul.f32 1.442695, %v1185_v7  ;;  %v1170_v11 = vpop.xlane.xlu1 %1169 }
 0xad1   :  { %v1186_v13 = vsub.f32 %v1154_v40, %v1170_v11 }
 0xad2   :  { %2075 = vpow2.f32 %v1195_v9 }
 0xad3   :  { %v1197_v14 = vmul.f32 1.442695, %v1186_v13 }
 0xad5   :  { %2077 = vpow2.f32 %v1197_v14 }
 0xad8   :  { %v2588_v49 = vpop.eup %2075 }
 0xad9   :  { %v1213_v29 = vsel %vm176_vm8, %v2588_v49, 0.0 }
 0xada   :  { %1214 = vadd.xlane.f32.xlu1 %v1213_v29 }
 0xadb   :  { %v2078_v15 = vpop.eup %2077 }
 0xadc   :  { %v1216_v16 = vsel %vm176_vm8, %v2078_v15, 0.0 }
 0xadd   :  { %1217 = vadd.xlane.f32.xlu2 %v1216_v16  ;;  %v1179_v40 = vpop.xlane.xlu0 %1178 }
 0xade   :  { %v1189_v42 = vsub.f32 %v2569_v47, %v1179_v40 }
 0xae0   :  { %v1182_v27 = vpop.xlane.xlu1 %1181  ;;  %v1203_v43 = vmul.f32 1.442695, %v1189_v42 }
 0xae1   :  { %v1190_v33 = vsub.f32 %v1158_v55, %v1182_v27 }
 0xae3   :  { %v1205_v36 = vmul.f32 1.442695, %v1190_v33 }
 0xae7   :  { %v1161_v17 = vpop.xlane.xlu2 %1160 }
 0xae8   :  { %v1183_v44 = vsub.f32 %v2576_v56, %v1161_v17 }
 0xaea   :  { %v1191_v45 = vmul.f32 1.442695, %v1183_v44 }
 0xaef   :  { %v1164_v50 = vpop.xlane.xlu2 %1163 }
 0xaf0   :  { %v1184_v19 = vsub.f32 %v1152_v60, %v1164_v50 }
 0xaf2   :  { %v1193_v20 = vmul.f32 1.442695, %v1184_v19 }
 0xaf4   :  { %2079 = vpow2.f32 %v1193_v20 }
 0xaf5   :  { %1297 = vrot.lane.b32.xlu2 %v2514_v8, %s2773_s30 }
 0xaf7   :  { %v1176_v21 = vpop.xlane.xlu2 %1175  ;;  %v1173_v31 = vpop.xlane.xlu1 %1172 }
 0xaf8   :  { %v1188_v22 = vsub.f32 %v1156_v63, %v1176_v21  ;;  %v1187_v37 = vsub.f32 %v1155_v1, %v1173_v31 }
 0xafa   :  { %v2080_v23 = vpop.eup %2079  ;;  %v1201_v24 = vmul.f32 1.442695, %v1188_v22  ;;  %v1199_v38 = vmul.f32 1.442695, %v1187_v37 }
 0xafb   :  { %v1210_v26 = vsel %vm176_vm8, %v2080_v23, 0.0 }
 0xafc   :  { %2081 = vpow2.f32 %v1201_v24  ;;  %1211 = vadd.xlane.f32.xlu0 %v1210_v26 }
 0xafd   :  { %2083 = vpow2.f32 %v1205_v36 }
 0xafe   :  { %2085 = vpow2.f32 %v1199_v38 }
 0xaff   :  { %2087 = vpow2.f32 %v1203_v43 }
 0xb00   :  { %2089 = vpow2.f32 %v1191_v45 }
 0xb02   :  { %v2596_v28 = vpop.eup %2081 }
 0xb03   :  { %v1222_v30 = vsel %vm176_vm8, %v2596_v28, 0.0  ;;  %v2603_v39 = vpop.eup %2083 }
 0xb04   :  { %1223 = vadd.xlane.f32.xlu1 %v1222_v30  ;;  %v1228_v32 = vsel %vm176_vm8, %v2603_v39, 0.0  ;;  %v2609_v35 = vpop.eup %2085 }
 0xb05   :  { %v1219_v41 = vsel %vm176_vm8, %v2609_v35, 0.0  ;;  %v2088_v46 = vpop.eup %2087 }
 0xb06   :  { %v1225_v58 = vsel %vm176_vm8, %v2088_v46, 0.0  ;;  %v2090_v48 = vpop.eup %2089 }
 0xb07   :  { %v1207_v55 = vsel %vm176_vm8, %v2090_v48, 0.0 }
 0xb0f   :  { %v1319_v34 = vpop.permute.xlu1 %1318 }
 0xb10   :  { %v1324_v25 = vsel %vm466_vm9, %v1319_v34, 0  ;;  %1276 = vrot.lane.b32.xlu0 %v2514_v8, %s2774_s0 }
 0xb11   :  { %1333 = vmatpush.bf16.msra.mxu0 %v1324_v25 }
 0xb1d   :  { %1375 = vrot.lane.b32.xlu1 %v2522_v12, %s2774_s0 }
 0xb1e   :  { %1229 = vadd.xlane.f32.xlu2 %v1228_v32 }
 0xb25   :  { %1396 = vrot.lane.b32.xlu1 %v2522_v12, %s2773_s30 }
 0xb26   :  { %1220 = vadd.xlane.f32.xlu2 %v1219_v41 }
 0xb2d   :  { %1417 = vrot.lane.b32.xlu1 %v2522_v12, %s2772_s29 }
 0xb35   :  { %1255 = vrot.lane.b32.xlu1 %v2514_v8, %s2775_s19 }
 0xb3a   :  { %1226 = vadd.xlane.f32.xlu0 %v1225_v58 }
 0xb42   :  { %1208 = vadd.xlane.f32.xlu0 %v1207_v55 }
 0xb4d   :  { %v1215_v47 = vpop.xlane.xlu1 %1214 }
 0xb4e   :  { %2091 = vrcp.f32 %v1215_v47 }
 0xb50   :  { %v1218_v51 = vpop.xlane.xlu2 %1217 }
 0xb51   :  { %2093 = vrcp.f32 %v1218_v51 }
 0xb54   :  { %v2092_v52 = vpop.eup %2091 }
 0xb55   :  { %v1241_v8 = vmul.f32 %v2092_v52, %v2588_v49 }
 0xb56   :  { %1354 = vrot.lane.b32.xlu0 %v2522_v12, %s2775_s19 }
 0xb57   :  { %v2094_v53 = vpop.eup %2093  ;;  %v1249_v60 = vpack.c.bf16 %v1241_v8, %v1241_v8  ;;  %v1945_v8 = vld [vmem:[%s2739_s6 + $0x18] sm:$0xff] }
 0xb58   :  { %v1242_v54 = vmul.f32 %v2094_v53, %v2078_v15  ;;  %v1298_v56 = vpop.permute.xlu2 %1297 }
 0xb59   :  { %v1303_v57 = vsel %vm466_vm9, %v1298_v56, 0 }
 0xb5a   :  { %v1250_v59 = vpack.c.bf16 %v1242_v54, %v1242_v54  ;;  %1312 = vmatpush.bf16.msrb.mxu3 %v1303_v57  ;;  %v1944_v54 = vld [vmem:[%s2739_s6 + $0x10] sm:$0xff] }
 0xb5c   :  { %1860 = vmatmul.msk.bf16.vlgmr.msra.gmra.mxu0 %vm176_vm8, %v1250_v59 }
 0xb5d   :  { %1859 = vmatmul.msk.bf16.vlgmr.msrb.gmra.mxu3 %vm176_vm8, %v1249_v60 }
 0xb6f   :  { %v1212_v61 = vpop.xlane.xlu0 %1211 }
 0xb70   :  { %2095 = vrcp.f32 %v1212_v61 }
 0xb76   :  { %v2096_v62 = vpop.eup %2095 }
 0xb77   :  { %v1240_v63 = vmul.f32 %v2096_v62, %v2080_v23  ;;  %v1224_v4 = vpop.xlane.xlu1 %1223 }
 0xb78   :  { %2097 = vrcp.f32 %v1224_v4 }
 0xb79   :  { %v1248_v1 = vpack.c.bf16 %v1240_v63, %v1240_v63 }
 0xb7e   :  { %v2098_v5 = vpop.eup %2097 }
 0xb7f   :  { %v1244_v7 = vmul.f32 %v2098_v5, %v2596_v28 }
 0xb81   :  { %v1252_v11 = vpack.c.bf16 %v1244_v7, %v1244_v7 }
 0xb82   :  { %v1277_v0 = vpop.permute.xlu0 %1276 }
 0xb83   :  { %v1282_v12 = vsel %vm466_vm9, %v1277_v0, 0 }
 0xb84   :  { %1291 = vmatpush.bf16.msrb.mxu2 %v1282_v12 }
 0xb87   :  { %1858 = vmatmul.msk.bf16.vlgmr.msrb.gmra.mxu2 %vm176_vm8, %v1248_v1 }
 0xb8f   :  { %v1376_v6 = vpop.permute.xlu1 %1375 }
 0xb90   :  { %v1381_v18 = vsel %vm466_vm9, %v1376_v6, 0 }
 0xb91   :  { %1390 = vmatpush.bf16.msra.mxu2 %v1381_v18  ;;  %v1230_v9 = vpop.xlane.xlu2 %1229 }
 0xb92   :  { %2099 = vrcp.f32 %v1230_v9 }
 0xb97   :  { %1862 = vmatmul.msk.bf16.vlgmr.msra.gmra.mxu2 %vm176_vm8, %v1252_v11  ;;  %v1397_v13 = vpop.permute.xlu1 %1396  ;;  %v2017_v11 = vld [vmem:[%s2738_s7 + $0x1] ss:$0 sm:$0xff] }
 0xb98   :  { %v1402_v14 = vsel %vm466_vm9, %v1397_v13, 0  ;;  %v2100_v49 = vpop.eup %2099 }
 0xb99   :  { %1411 = vmatpush.bf16.msra.mxu3 %v1402_v14  ;;  %v1246_v29 = vmul.f32 %v2100_v49, %v2603_v39  ;;  %v1221_v28 = vpop.xlane.xlu2 %1220 }
 0xb9b   :  { %v1254_v17 = vpack.c.bf16 %v1246_v29, %v1246_v29 }
 0xb9f   :  { %v1418_v15 = vpop.permute.xlu1 %1417 }
 0xba0   :  { %v1423_v16 = vsel %vm466_vm9, %v1418_v15, 0 }
 0xba1   :  { %1432 = vmatpush.bf16.msrb.mxu0 %v1423_v16 }
 0xba4   :  { %1864 = vmatmul.msk.bf16.vlgmr.msrb.gmra.mxu0 %vm176_vm8, %v1254_v17 }
 0xba7   :  { %v1256_v50 = vpop.permute.xlu1 %1255 }
 0xba8   :  { %v1261_v19 = vsel %vm466_vm9, %v1256_v50, 0 }
 0xba9   :  { %1270 = vmatpush.bf16.msrb.mxu1 %v1261_v19 }
 0xbad   :  { %v1227_v20 = vpop.xlane.xlu0 %1226 }
 0xbae   :  { %2101 = vrcp.f32 %v1227_v20 }
 0xbb4   :  { %v2102_v21 = vpop.eup %2101 }
 0xbb5   :  { %v1245_v22 = vmul.f32 %v2102_v21, %v2088_v46  ;;  %v1209_v23 = vpop.xlane.xlu0 %1208 }
 0xbb6   :  { %2103 = vrcp.f32 %v1209_v23 }
 0xbb7   :  { %v1253_v24 = vpack.c.bf16 %v1245_v22, %v1245_v22  ;;  %2105 = vrcp.f32 %v1221_v28 }
 0xbb9   :  { %1863 = vmatmul.msk.bf16.vlgmr.msra.gmra.mxu3 %vm176_vm8, %v1253_v24 }
 0xbbc   :  { %v2104_v26 = vpop.eup %2103 }
 0xbbd   :  { %v1239_v27 = vmul.f32 %v2104_v26, %v2090_v48  ;;  %v2106_v31 = vpop.eup %2105 }
 0xbbe   :  { %v1243_v36 = vmul.f32 %v2106_v31, %v2609_v35 }
 0xbbf   :  { %v1247_v30 = vpack.c.bf16 %v1239_v27, %v1239_v27 }
 0xbc0   :  { %v1251_v25 = vpack.c.bf16 %v1243_v36, %v1243_v36 }
 0xbc1   :  { %1857 = vmatmul.msk.bf16.vlgmr.msrb.gmra.mxu1 %vm176_vm8, %v1247_v30 }
 0xbc8   :  { %v1355_v33 = vpop.permute.xlu0 %1354 }
 0xbc9   :  { %v1360_v34 = vsel %vm466_vm9, %v1355_v33, 0 }
 0xbca   :  { %1369 = vmatpush.bf16.msra.mxu1 %v1360_v34  ;;  %v1946_v34 = vld [vmem:[%s2743_s10 + $0x10] sm:$0xff] }
 0xbce   :  { %1485 = vmatpush.bf16.msrb.mxu1 %v1945_v8 }
 0xbd1   :  { %1861 = vmatmul.msk.bf16.vlgmr.msra.gmra.mxu1 %vm176_vm8, %v1251_v25 }
 0xbd2   :  { %1486 = vmatpush.bf16.msrb.mxu1 %v1944_v54 }
 0xbd9   :  { %v1335_v37 = vpop.f32.mrf.mxu0 }
 0xbe0   :  { %v1314_v38 = vpop.f32.mrf.mxu3 }
 0xbe1   :  { %v1337_v39 = vpop.f32.mrf.mxu0 }
 0xbe8   :  { %v1316_v32 = vpop.f32.mrf.mxu3 }
 0xc0a   :  { %v1293_v40 = vpop.f32.mrf.mxu2 }
 0xc12   :  { %v1295_v41 = vpop.f32.mrf.mxu2 }
 0xc1a   :  { %v1392_v42 = vpop.f32.mrf.mxu2 }
 0xc1b   :  { %v1989_v43 = vpack.i.bf16 %v1392_v42, %v1293_v40 }
 0xc1d   :  { %1990 = vrot.lane.b32.xlu1 %v1989_v43, %s2776_s2 }
 0xc21   :  { %v1434_v44 = vpop.f32.mrf.mxu0 }
 0xc22   :  { %v1999_v45 = vpack.i.bf16 %v1434_v44, %v1335_v37  ;;  %v1394_v46 = vpop.f32.mrf.mxu2 }
 0xc25   :  { %2000 = vrot.lane.b32.xlu1 %v1999_v45, %s2777_s21 }
 0xc29   :  { %v1436_v58 = vpop.f32.mrf.mxu0 }
 0xc3c   :  { %v1413_v35 = vpop.f32.mrf.mxu3 }
 0xc3d   :  { %v1994_v48 = vpack.i.bf16 %v1413_v35, %v1314_v38 }
 0xc3e   :  { %v1272_v55 = vpop.f32.mrf.mxu1 }
 0xc3f   :  { %1995 = vrot.lane.b32.xlu2 %v1994_v48, %s2778_s1  ;;  %v2018_v48 = vld [vmem:[%s2740_s8 + $0x1] ss:$0 sm:$0xff] }
 0xc44   :  { %v1415_v47 = vpop.f32.mrf.mxu3 }
 0xc46   :  { %v1274_v51 = vpop.f32.mrf.mxu1 }
 0xc4e   :  { %v1371_v52 = vpop.f32.mrf.mxu1 }
 0xc56   :  { %v1373_v53 = vpop.f32.mrf.mxu1 }
 0xc8f   :  { %v1991_v56 = vpop.permute.xlu1 %1990 }
 0xc90   :  { %v1993_v57 = vunpack.i.h.bf16 %v1991_v56  ;;  %v1992_v59 = vunpack.i.l.bf16 %v1991_v56 }
 0xc92   :  { %v1450_v0 = vsel %vm176_vm8, %v1371_v52, %v1993_v57  ;;  %v1351_v12 = vsel %vm176_vm8, %v1272_v55, %v1992_v59  ;;  %v2019_v52 = vld [vmem:[%s2741_s9 + $0x1] ss:$0 sm:$0xff] }
 0xc97   :  { %v2001_v60 = vpop.permute.xlu1 %2000 }
 0xc98   :  { %v2003_v1 = vunpack.i.h.bf16 %v2001_v60  ;;  %v2002_v4 = vunpack.i.l.bf16 %v2001_v60  ;;  %v1951_v60 = vld [vmem:[%s2745_s12 + $0x38] sm:$0xff] }
 0xc99   :  { %v1996_v61 = vpop.permute.xlu2 %1995  ;;  %1657 = vmatpush.bf16.msrb.mxu3 %v1951_v60 }
 0xc9a   :  { %v1998_v62 = vunpack.i.h.bf16 %v1996_v61  ;;  %v1997_v63 = vunpack.i.l.bf16 %v1996_v61  ;;  %v1950_v61 = vld [vmem:[%s2745_s12 + $0x30] sm:$0xff] }
 0xc9c   :  { %v1352_v5 = vsel %vm559_vm10, %v1351_v12, %v1997_v63  ;;  %v1451_v6 = vsel %vm559_vm10, %v1450_v0, %v1998_v62  ;;  %v1949_v62 = vld [vmem:[%s2745_s12 + $0x28] sm:$0xff]  ;;  %v2020_v63 = vld [vmem:[%s2742_s11 + $0x1] ss:$0 sm:$0xff] }
 0xc9d   :  { %v1353_v18 = vsel %vm561_vm11, %v1352_v5, %v2002_v4  ;;  %v1452_v7 = vsel %vm561_vm11, %v1451_v6, %v2003_v1  ;;  %1658 = vmatpush.bf16.msrb.mxu3 %v1950_v61  ;;  %v1948_v12 = vld [vmem:[%s2745_s12 + $0x20] sm:$0xff] }
 0xc9e   :  { %v1458_v9 = vpack.c.bf16 %v1452_v7, %v1353_v18 }
 0xca0   :  { %1878 = vmatmul.msk.bf16.vlgmr.msrb.gmra.mxu1 %vm64_vm0, %v1458_v9 }
 0xca1   :  { %1659 = vmatpush.bf16.msrb.mxu3 %v1949_v62 }
 0xca5   :  { %1660 = vmatpush.bf16.msrb.mxu3 %v1948_v12 }
 0xd1d   :  { %v1488_v13 = vpop.f32.mrf.mxu1 }
 0xd1e   :  { %v1489_v14 = vadd.f32 %v2017_v11, %v1488_v13 }
 0xd20   :  { %v1493_v49 = vadd.f32 %v1489_v14, %v2504_v2 }
 0xd22   :  { %v1499_v29 = vsel %vm64_vm0, %v1493_v49, 0.0 }
 0xd23   :  { %1500 = vadd.xlane.f32.xlu0 %v1499_v29 }
 0xd25   :  { %v1490_v15 = vpop.f32.mrf.mxu1 }
 0xd26   :  { %v1491_v16 = vadd.f32 %v2017_v11, %v1490_v15 }
 0xd28   :  { %v1494_v17 = vadd.f32 %v1491_v16, %v2506_v3  ;;  %v1947_v3 = vld [vmem:[%s2743_s10 + $0x18] sm:$0xff] }
 0xd29   :  { %1585 = vmatpush.bf16.msrb.mxu2 %v1947_v3 }
 0xd2a   :  { %v1502_v50 = vsel %vm64_vm0, %v1494_v17, 0.0 }
 0xd2b   :  { %1503 = vadd.xlane.f32.xlu1 %v1502_v50 }
 0xd2d   :  { %1586 = vmatpush.bf16.msrb.mxu2 %v1946_v34 }
 0xd96   :  { %v1501_v19 = vpop.xlane.xlu0 %1500 }
 0xd97   :  { %v1505_v20 = vmul.f32 %v1501_v19, %v2237_v10 }
 0xd99   :  { %v1507_v21 = vsub.f32 %v1493_v49, %v1505_v20 }
 0xd9b   :  { %v1509_v22 = vmul.f32 %v1507_v21, %v1507_v21 }
 0xd9d   :  { %v1511_v23 = vsel %vm64_vm0, %v1509_v22, 0.0 }
 0xd9e   :  { %v1504_v24 = vpop.xlane.xlu1 %1503  ;;  %1512 = vadd.xlane.f32.xlu2 %v1511_v23 }
 0xd9f   :  { %v1506_v2 = vmul.f32 %v1504_v24, %v2237_v10 }
 0xda1   :  { %v1508_v26 = vsub.f32 %v1494_v17, %v1506_v2  ;;  %v2021_v2 = vld [vmem:[%s2744_s13 + $0x1] ss:$0 sm:$0xff] }
 0xda3   :  { %v1510_v27 = vmul.f32 %v1508_v26, %v1508_v26 }
 0xda5   :  { %v1514_v28 = vsel %vm64_vm0, %v1510_v27, 0.0 }
 0xda6   :  { %1515 = vadd.xlane.f32.xlu0 %v1514_v28 }
 0xe11   :  { %v1513_v30 = vpop.xlane.xlu2 %1512 }
 0xe12   :  { %v1517_v31 = vmul.f32 %v1513_v30, %v2237_v10 }
 0xe14   :  { %v1519_v33 = vadd.f32 1e-12, %v1517_v31 }
 0xe16   :  { %2107 = vrsqrt.f32 %v1519_v33  ;;  %vm1527_vm9 = vweird.f32 %v1519_v33 }
 0xe19   :  { %v1516_v36 = vpop.xlane.xlu0 %1515 }
 0xe1a   :  { %v1518_v25 = vmul.f32 %v1516_v36, %v2237_v10 }
 0xe1c   :  { %v2108_v37 = vpop.eup %2107  ;;  %v1520_v38 = vadd.f32 1e-12, %v1518_v25 }
 0xe1d   :  { %v1522_v39 = vmul.f32 %v2108_v37, %v1519_v33  ;;  %vm1528_vm8 = vweird.f32 %v2108_v37 }
 0xe1e   :  { %2109 = vrsqrt.f32 %v1520_v38  ;;  %vm1529_vm10 = vmor %vm1527_vm9, %vm1528_vm8  ;;  %vm1537_vm14 = vweird.f32 %v1520_v38 }
 0xe1f   :  { %v1523_v32 = vmul.f32 %v2108_v37, %v1522_v39 }
 0xe21   :  { %v1524_v40 = vmul.f32 0.5, %v1523_v32 }
 0xe23   :  { %v1525_v41 = vsub.f32 1.5, %v1524_v40 }
 0xe24   :  { %v2110_v42 = vpop.eup %2109 }
 0xe25   :  { %v1526_v43 = vmul.f32 %v2108_v37, %v1525_v41  ;;  %v1532_v44 = vmul.f32 %v2110_v42, %v1520_v38  ;;  %vm1538_vm11 = vweird.f32 %v2110_v42 }
 0xe26   :  { %vm1539_vm15 = vmor %vm1537_vm14, %vm1538_vm11 }
 0xe27   :  { %v1533_v45 = vmul.f32 %v2110_v42, %v1532_v44  ;;  %v1530_v46 = vsel %vm1529_vm10, %v2108_v37, %v1526_v43  ;;  %v1953_v44 = vld [vmem:[%s2749_s16 + $0x8] sm:$0xff] }
 0xe28   :  { %v1541_v55 = vmul.f32 %v1530_v46, %v1507_v21  ;;  %1757 = vmatpush.bf16.msra.mxu0 %v1953_v44 }
 0xe29   :  { %v1534_v58 = vmul.f32 0.5, %v1533_v45 }
 0xe2a   :  { %v1546_v53 = vmul.f32 %v2018_v48, %v1541_v55 }
 0xe2b   :  { %v1535_v35 = vsub.f32 1.5, %v1534_v58 }
 0xe2c   :  { %v1551_v56 = vadd.f32 %v2019_v52, %v1546_v53 }
 0xe2d   :  { %v1536_v47 = vmul.f32 %v2110_v42, %v1535_v35  ;;  %v1952_v35 = vld [vmem:[%s2749_s16] sm:$0xff] }
 0xe2e   :  { %1758 = vmatpush.bf16.msra.mxu0 %v1952_v35 }
 0xe2f   :  { %v1540_v51 = vsel %vm1539_vm15, %v2110_v42, %v1536_v47 }
 0xe30   :  { %v1542_v8 = vmul.f32 %v1540_v51, %v1508_v26 }
 0xe32   :  { %v1547_v54 = vmul.f32 %v2018_v48, %v1542_v8 }
 0xe34   :  { %v1552_v57 = vadd.f32 %v2019_v52, %v1547_v54 }
 0xe36   :  { %v1558_v59 = vpack.c.bf16 %v1552_v57, %v1551_v56 }
 0xe38   :  { %1894 = vmatmul.msk.bf16.vlgmr.msrb.gmra.mxu2 %vm64_vm0, %v1558_v59 }
 0xebb   :  { %v1588_v0 = vpop.f32.mrf.mxu2 }
 0xebc   :  { %v1589_v1 = vadd.f32 %v2020_v63, %v1588_v0 }
 0xebe   :  { %v1593_v4 = vmul.f32 %v1589_v1, %v1589_v1 }
 0xec0   :  { %v1595_v5 = vmul.f32 %v1593_v4, %v1589_v1  ;;  %v2023_v4 = vld [vmem:[%s2747_s15 + $0x1] ss:$0 sm:$0xff] }
 0xec2   :  { %v1597_v6 = vmul.f32 0.044715, %v1595_v5 }
 0xec3   :  { %v1590_v18 = vpop.f32.mrf.mxu2 }
 0xec4   :  { %v1599_v7 = vadd.f32 %v1597_v6, %v1589_v1  ;;  %v1591_v9 = vadd.f32 %v2020_v63, %v1590_v18 }
 0xec6   :  { %v1601_v11 = vmul.f32 0.7978846, %v1599_v7  ;;  %v1594_v13 = vmul.f32 %v1591_v9, %v1591_v9 }
 0xec8   :  { %v1596_v14 = vmul.f32 %v1594_v13, %v1591_v9  ;;  %2111 = vtanh.f32 %v1601_v11 }
 0xeca   :  { %v1598_v49 = vmul.f32 0.044715, %v1596_v14  ;;  %v2024_v14 = vld [vmem:[%s2748_s17] ss:$0 sm:$0xff] }
 0xecc   :  { %v1600_v29 = vadd.f32 %v1598_v49, %v1591_v9 }
 0xece   :  { %v1602_v15 = vmul.f32 0.7978846, %v1600_v29  ;;  %v2112_v16 = vpop.eup %2111 }
 0xecf   :  { %v1605_v17 = vadd.f32 1.0, %v2112_v16 }
 0xed0   :  { %2113 = vtanh.f32 %v1602_v15 }
 0xed1   :  { %v1607_v19 = vmul.f32 0.5, %v1605_v17 }
 0xed3   :  { %v1609_v22 = vmul.f32 %v1607_v19, %v1589_v1 }
 0xed6   :  { %v2114_v50 = vpop.eup %2113 }
 0xed7   :  { %v1606_v20 = vadd.f32 1.0, %v2114_v50 }
 0xed9   :  { %v1608_v21 = vmul.f32 0.5, %v1606_v20 }
 0xedb   :  { %v1610_v23 = vmul.f32 %v1608_v21, %v1591_v9 }
 0xedd   :  { %v1620_v24 = vpack.c.bf16 %v1610_v23, %v1609_v22 }
 0xedf   :  { %1920 = vmatmul.msk.bf16.vlgmr.msrb.gmra.mxu3 %vm851_vm3, %v1620_v24 }
 0xf62   :  { %v1662_v26 = vpop.f32.mrf.mxu3 }
 0xf63   :  { %v1663_v27 = vadd.f32 %v2021_v2, %v1662_v26 }
 0xf65   :  { %v1667_v28 = vadd.f32 %v1663_v27, %v1551_v56 }
 0xf67   :  { %v1673_v3 = vsel %vm64_vm0, %v1667_v28, 0.0 }
 0xf68   :  { %1674 = vadd.xlane.f32.xlu1 %v1673_v3 }
 0xf6a   :  { %v1664_v30 = vpop.f32.mrf.mxu3 }
 0xf6b   :  { %v1665_v31 = vadd.f32 %v2021_v2, %v1664_v30 }
 0xf6d   :  { %v1668_v33 = vadd.f32 %v1665_v31, %v1552_v57 }
 0xf6f   :  { %v1676_v34 = vsel %vm64_vm0, %v1668_v33, 0.0 }
 0xf70   :  { %1677 = vadd.xlane.f32.xlu0 %v1676_v34 }
 0xfdb   :  { %v1675_v36 = vpop.xlane.xlu1 %1674 }
 0xfdc   :  { %v1679_v25 = vmul.f32 %v1675_v36, %v2237_v10 }
 0xfde   :  { %v1681_v37 = vsub.f32 %v1667_v28, %v1679_v25 }
 0xfe0   :  { %v1683_v38 = vmul.f32 %v1681_v37, %v1681_v37 }
 0xfe2   :  { %v1685_v39 = vsel %vm64_vm0, %v1683_v38, 0.0 }
 0xfe3   :  { %v1678_v32 = vpop.xlane.xlu0 %1677  ;;  %1686 = vadd.xlane.f32.xlu2 %v1685_v39 }
 0xfe4   :  { %v1680_v40 = vmul.f32 %v1678_v32, %v2237_v10 }
 0xfe6   :  { %v1682_v41 = vsub.f32 %v1668_v33, %v1680_v40 }
 0xfe8   :  { %v1684_v42 = vmul.f32 %v1682_v41, %v1682_v41 }
 0xfea   :  { %v1688_v43 = vsel %vm64_vm0, %v1684_v42, 0.0 }
 0xfeb   :  { %1689 = vadd.xlane.f32.xlu1 %v1688_v43 }
0x1056   :  { %v1687_v45 = vpop.xlane.xlu2 %1686 }
0x1057   :  { %v1691_v46 = vmul.f32 %v1687_v45, %v2237_v10 }
0x1059   :  { %v1693_v58 = vadd.f32 1e-12, %v1691_v46 }
0x105b   :  { %2115 = vrsqrt.f32 %v1693_v58  ;;  %vm1701_vm2 = vweird.f32 %v1693_v58 }
0x105e   :  { %v1690_v48 = vpop.xlane.xlu1 %1689 }
0x105f   :  { %v1692_v55 = vmul.f32 %v1690_v48, %v2237_v10  ;;  %v2022_v10 = vld [vmem:[%s2746_s14 + $0x1] ss:$0 sm:$0xff] }
0x1061   :  { %v2116_v47 = vpop.eup %2115  ;;  %v1694_v51 = vadd.f32 1e-12, %v1692_v55 }
0x1062   :  { %v1696_v52 = vmul.f32 %v2116_v47, %v1693_v58  ;;  %vm1702_vm1 = vweird.f32 %v2116_v47 }
0x1063   :  { %2117 = vrsqrt.f32 %v1694_v51  ;;  %vm1703_vm3 = vmor %vm1701_vm2, %vm1702_vm1  ;;  %vm1711_vm5 = vweird.f32 %v1694_v51 }
0x1064   :  { %v1697_v53 = vmul.f32 %v2116_v47, %v1696_v52 }
0x1066   :  { %v1698_v8 = vmul.f32 0.5, %v1697_v53 }
0x1068   :  { %v1699_v54 = vsub.f32 1.5, %v1698_v8 }
0x1069   :  { %v2118_v56 = vpop.eup %2117 }
0x106a   :  { %v1700_v57 = vmul.f32 %v2116_v47, %v1699_v54  ;;  %v1706_v59 = vmul.f32 %v2118_v56, %v1694_v51  ;;  %vm1712_vm4 = vweird.f32 %v2118_v56 }
0x106b   :  { %vm1713_vm6 = vmor %vm1711_vm5, %vm1712_vm4 }
0x106c   :  { %v1707_v60 = vmul.f32 %v2118_v56, %v1706_v59  ;;  %v1704_v61 = vsel %vm1703_vm3, %v2116_v47, %v1700_v57 }
0x106d   :  { %v1715_v0 = vmul.f32 %v1704_v61, %v1681_v37 }
0x106e   :  { %v1708_v62 = vmul.f32 0.5, %v1707_v60 }
0x106f   :  { %v1720_v5 = vmul.f32 %v2022_v10, %v1715_v0 }
0x1070   :  { %v1709_v63 = vsub.f32 1.5, %v1708_v62 }
0x1071   :  { %v1725_v7 = vadd.f32 %v2023_v4, %v1720_v5 }
0x1072   :  { %v1710_v12 = vmul.f32 %v2118_v56, %v1709_v63 }
0x1074   :  { %v1714_v1 = vsel %vm1713_vm6, %v2118_v56, %v1710_v12 }
0x1075   :  { %v1716_v6 = vmul.f32 %v1714_v1, %v1682_v41 }
0x1077   :  { %v1721_v18 = vmul.f32 %v2022_v10, %v1716_v6 }
0x1079   :  { %v1726_v9 = vadd.f32 %v2023_v4, %v1721_v18 }
0x107b   :  { %v1731_v11 = vpack.c.bf16 %v1726_v9, %v1725_v7 }
0x107d   :  { %1931 = vmatmul.msk.bf16.vlgmr.msra.gmra.mxu0 %vm64_vm0, %v1731_v11 }
0x10fa   :  { %v1760_v13 = vpop.f32.mrf.mxu0 }
0x10fb   :  { %v1761_v49 = vadd.f32 %v2024_v14, %v1760_v13 }
0x10fd   :  { %v1765_v16 = vmax.f32 %v1761_v49, 0.0 }
0x1102   :  { %v1762_v29 = vpop.f32.mrf.mxu0 }
0x1103   :  { %v1763_v15 = vadd.f32 %v2024_v14, %v1762_v29 }
0x1105   :  { %v1766_v17 = vmax.f32 %v1763_v15, 0.0 }
0x1107   :  { %v1957_v50 = vpack.c.bf16 %v1766_v17, %v1765_v16 }
0x1109   :  { %1958 = vst [vmem:[%s2750_s18] sm:$0xff] %v1957_v50  }

</bundles_post_ra>
